<compile_context>
chip_gen: v5e
topology: v5e:2x2
jax: 0.10.0
libtpu: 0.0.40
codegen_flags: <defaults>
</compile_context>

<pallas_src>
import functools

import jax
import jax.numpy as jnp
from jax.experimental import pallas as pl
from jax.experimental.pallas import tpu as pltpu

D_IN, D_H1, D_H2, D_OUT = 784, 192, 32, 10
H1_PAD, H2_PAD, OUT_PAD = 256, 128, 128      # 128-lane-aligned padded widths


def _mlp_kernel(x_ref, w1_ref, b1_ref, w2_ref, b2_ref, w3_ref, b3_ref, o_ref):
    # Hot path: three bf16 MXU matmuls with f32 accumulation, bias + ReLU on VPU.
    x = x_ref[...]                                                   # (bb, 784) bf16
    h1 = jnp.dot(x, w1_ref[...], preferred_element_type=jnp.float32) + b1_ref[...]
    h1 = jnp.maximum(h1, 0.0).astype(jnp.bfloat16)                   # ReLU (dropout = id in eval)
    h2 = jnp.dot(h1, w2_ref[...], preferred_element_type=jnp.float32) + b2_ref[...]
    h2 = jnp.maximum(h2, 0.0).astype(jnp.bfloat16)
    out = jnp.dot(h2, w3_ref[...], preferred_element_type=jnp.float32) + b3_ref[...]
    o_ref[...] = out                                                 # (bb, 128) f32, lane-dense


def _pad2(a, rows, cols):
    """Zero-pad a 2-D array up to (rows, cols)."""
    r, c = a.shape
    return jnp.pad(a, ((0, rows - r), (0, cols - c)))


@functools.partial(jax.jit, static_argnames=("block_b",))
def mlp_alpha_forward(x_img, w1, b1, w2, b2, w3, b3, *, block_b=512):
    B = x_img.shape[0]
    x = x_img.reshape(B, -1).astype(jnp.bfloat16)                    # (B, 784)
    assert x.shape[1] == D_IN

    # Pad batch to a multiple of block_b (zero rows -> harmless extra work).
    n_steps = pl.cdiv(B, block_b)
    B_pad = n_steps * block_b
    if B_pad != B:
        x = jnp.pad(x, ((0, B_pad - B), (0, 0)))

    # Zero-pad feature dims to 128-lane multiples; math is unchanged because the
    # padded weight rows/cols and bias entries are zero (and ReLU(0) == 0).
    w1p = _pad2(w1, D_IN, H1_PAD).astype(jnp.bfloat16)
    b1p = _pad2(b1, 1, H1_PAD)                                       # f32
    w2p = _pad2(w2, H1_PAD, H2_PAD).astype(jnp.bfloat16)
    b2p = _pad2(b2, 1, H2_PAD)
    w3p = _pad2(w3, H2_PAD, OUT_PAD).astype(jnp.bfloat16)
    b3p = _pad2(b3, 1, OUT_PAD)

    # Weights / biases are small: give every grid step the full arrays
    # (constant index_map -> buffer is revisited, not re-DMA'd each step).
    full = lambda shape: pl.BlockSpec(shape, lambda i: (0,) * len(shape))

    out_padded = pl.pallas_call(
        _mlp_kernel,
        out_shape=jax.ShapeDtypeStruct((B_pad, OUT_PAD), jnp.float32),
        grid_spec=pltpu.PrefetchScalarGridSpec(
            num_scalar_prefetch=0,
            grid=(n_steps,),
            in_specs=[
                pl.BlockSpec((block_b, D_IN), lambda i: (i, 0)),     # x tile
                full((D_IN, H1_PAD)),   full((1, H1_PAD)),           # linear1
                full((H1_PAD, H2_PAD)), full((1, H2_PAD)),           # linear2
                full((H2_PAD, OUT_PAD)), full((1, OUT_PAD)),         # linear3
            ],
            out_specs=pl.BlockSpec((block_b, OUT_PAD), lambda i: (i, 0)),
        ),
        compiler_params=pltpu.CompilerParams(
            dimension_semantics=("parallel",),      # shards steps across TCs on v7x
            vmem_limit_bytes=32 * 1024 * 1024,      # headroom for large block_b (safe on v5e..v7x)
        ),
    )(x, w1p, b1p, w2p, b2p, w3p, b3p)

    return out_padded[:B, :D_OUT]


def _init_linear(key, fan_in, fan_out):
    # Deterministic init mimicking torch.nn.Linear: U(-1/sqrt(fan_in), 1/sqrt(fan_in))
    kw, kb = jax.random.split(key)
    bound = 1.0 / (fan_in ** 0.5)
    w = jax.random.uniform(kw, (fan_in, fan_out), jnp.float32, -bound, bound)
    b = jax.random.uniform(kb, (1, fan_out), jnp.float32, -bound, bound)
    return w, b


def _reference_forward(x_img, w1, b1, w2, b2, w3, b3):
    # Pure-JAX reference with the same bf16 input/weight quantization as the kernel.
    bf = lambda a: a.astype(jnp.bfloat16).astype(jnp.float32)
    x = bf(x_img.reshape(x_img.shape[0], -1))
    h1 = bf(jnp.maximum(x @ bf(w1) + b1, 0.0))
    h2 = bf(jnp.maximum(h1 @ bf(w2) + b2, 0.0))
    return h2 @ bf(w3) + b3


if __name__ == "__main__":
    key = jax.random.PRNGKey(0)
    kx, k1, k2, k3 = jax.random.split(key, 4)

    # B=300 with block_b=128 exercises a multi-step (3) grid AND the padded last tile.
    B = 300
    x_img = jax.random.normal(kx, (B, 1, 28, 28), jnp.float32)   # NCHW input

    w1, b1 = _init_linear(k1, D_IN, D_H1)
    w2, b2 = _init_linear(k2, D_H1, D_H2)
    w3, b3 = _init_linear(k3, D_H2, D_OUT)

    out = mlp_alpha_forward(x_img, w1, b1, w2, b2, w3, b3, block_b=128)
    out = jax.block_until_ready(out)

    ref = _reference_forward(x_img, w1, b1, w2, b2, w3, b3)
    assert out.shape == (B, D_OUT)
    assert jnp.allclose(out, ref, atol=1e-2, rtol=1e-2), float(jnp.max(jnp.abs(out - ref)))

    print("KERNEL_OK")
</pallas_src>

<mosaic_0001>
module attributes {stable_mosaic.version = 11 : i64} {
  func.func @_mlp_kernel(%arg0: i32, %arg1: memref<128x784xbf16, #tpu.memory_space<vmem>>, %arg2: memref<784x256xbf16, #tpu.memory_space<vmem>>, %arg3: memref<1x256xf32, #tpu.memory_space<vmem>>, %arg4: memref<256x128xbf16, #tpu.memory_space<vmem>>, %arg5: memref<1x128xf32, #tpu.memory_space<vmem>>, %arg6: memref<128x128xbf16, #tpu.memory_space<vmem>>, %arg7: memref<1x128xf32, #tpu.memory_space<vmem>>, %arg8: memref<128x128xf32, #tpu.memory_space<vmem>>) attributes {dimension_semantics = [#tpu.dimension_semantics<parallel>], iteration_bounds = array<i64: 3>, scalar_prefetch = 0 : i64, scratch_operands = 0 : i64, tpu.core_type = #tpu.core_type<tc>, window_params = [{transform_indices = @transform_0, window_bounds = array<i64: 128, 784>}, {pipeline_mode = #tpu.pipeline_mode<synchronous>, transform_indices = @transform_1, window_bounds = array<i64: 784, 256>}, {pipeline_mode = #tpu.pipeline_mode<synchronous>, transform_indices = @transform_2, window_bounds = array<i64: 1, 256>}, {pipeline_mode = #tpu.pipeline_mode<synchronous>, transform_indices = @transform_3, window_bounds = array<i64: 256, 128>}, {pipeline_mode = #tpu.pipeline_mode<synchronous>, transform_indices = @transform_4, window_bounds = array<i64: 1, 128>}, {pipeline_mode = #tpu.pipeline_mode<synchronous>, transform_indices = @transform_5, window_bounds = array<i64: 128, 128>}, {pipeline_mode = #tpu.pipeline_mode<synchronous>, transform_indices = @transform_6, window_bounds = array<i64: 1, 128>}, {transform_indices = @transform_7, window_bounds = array<i64: 128, 128>}]} {
    %c0 = arith.constant 0 : index
    %c0_0 = arith.constant 0 : index
    %0 = vector.load %arg1[%c0, %c0_0] : memref<128x784xbf16, #tpu.memory_space<vmem>>, vector<128x784xbf16>
    %c0_1 = arith.constant 0 : index
    %c0_2 = arith.constant 0 : index
    %1 = vector.load %arg2[%c0_1, %c0_2] : memref<784x256xbf16, #tpu.memory_space<vmem>>, vector<784x256xbf16>
    %cst = arith.constant dense<0.000000e+00> : vector<128x256xf32>
    %2 = tpu.matmul %0, %1, %cst {dimension_numbers = #tpu.dot_dimension_numbers<[1], [0], [0], [1], [0, 0, 1, 1], [], []>} : vector<128x784xbf16>, vector<784x256xbf16>, vector<128x256xf32> -> vector<128x256xf32>
    %c0_3 = arith.constant 0 : index
    %c0_4 = arith.constant 0 : index
    %3 = vector.load %arg3[%c0_3, %c0_4] : memref<1x256xf32, #tpu.memory_space<vmem>>, vector<1x256xf32>
    %4 = vector.broadcast %3 : vector<1x256xf32> to vector<128x256xf32>
    %5 = arith.addf %2, %4 : vector<128x256xf32>
    %cst_5 = arith.constant 0.000000e+00 : f32
    %6 = vector.broadcast %cst_5 : f32 to vector<128x256xf32>
    %7 = arith.maximumf %5, %6 : vector<128x256xf32>
    %8 = arith.truncf %7 : vector<128x256xf32> to vector<128x256xbf16>
    %c0_6 = arith.constant 0 : index
    %c0_7 = arith.constant 0 : index
    %9 = vector.load %arg4[%c0_6, %c0_7] : memref<256x128xbf16, #tpu.memory_space<vmem>>, vector<256x128xbf16>
    %cst_8 = arith.constant dense<0.000000e+00> : vector<128x128xf32>
    %10 = tpu.matmul %8, %9, %cst_8 {dimension_numbers = #tpu.dot_dimension_numbers<[1], [0], [0], [1], [0, 0, 1, 1], [], []>} : vector<128x256xbf16>, vector<256x128xbf16>, vector<128x128xf32> -> vector<128x128xf32>
    %c0_9 = arith.constant 0 : index
    %c0_10 = arith.constant 0 : index
    %11 = vector.load %arg5[%c0_9, %c0_10] : memref<1x128xf32, #tpu.memory_space<vmem>>, vector<1x128xf32>
    %12 = vector.broadcast %11 : vector<1x128xf32> to vector<128x128xf32>
    %13 = arith.addf %10, %12 : vector<128x128xf32>
    %cst_11 = arith.constant 0.000000e+00 : f32
    %14 = vector.broadcast %cst_11 : f32 to vector<128x128xf32>
    %15 = arith.maximumf %13, %14 : vector<128x128xf32>
    %16 = arith.truncf %15 : vector<128x128xf32> to vector<128x128xbf16>
    %c0_12 = arith.constant 0 : index
    %c0_13 = arith.constant 0 : index
    %17 = vector.load %arg6[%c0_12, %c0_13] : memref<128x128xbf16, #tpu.memory_space<vmem>>, vector<128x128xbf16>
    %cst_14 = arith.constant dense<0.000000e+00> : vector<128x128xf32>
    %18 = tpu.matmul %16, %17, %cst_14 {dimension_numbers = #tpu.dot_dimension_numbers<[1], [0], [0], [1], [0, 0, 1, 1], [], []>} : vector<128x128xbf16>, vector<128x128xbf16>, vector<128x128xf32> -> vector<128x128xf32>
    %c0_15 = arith.constant 0 : index
    %c0_16 = arith.constant 0 : index
    %19 = vector.load %arg7[%c0_15, %c0_16] : memref<1x128xf32, #tpu.memory_space<vmem>>, vector<1x128xf32>
    %20 = vector.broadcast %19 : vector<1x128xf32> to vector<128x128xf32>
    %21 = arith.addf %18, %20 : vector<128x128xf32>
    %c0_17 = arith.constant 0 : index
    %c0_18 = arith.constant 0 : index
    %22 = vector.load %arg8[%c0_17, %c0_18] : memref<128x128xf32, #tpu.memory_space<vmem>>, vector<128x128xf32>
    tpu.vector_store %arg8[%c0_17, %c0_18], %21 {strides = array<i32>} : memref<128x128xf32, #tpu.memory_space<vmem>>, vector<128x128xf32>,
    return
  }
  func.func @transform_0(%arg0: i32) -> (i32, i32) {
    %c0_i32 = arith.constant 0 : i32
    %c0_i32_0 = arith.constant 0 : i32
    return %arg0, %c0_i32 : i32, i32
  }
  func.func @transform_1(%arg0: i32) -> (i32, i32) {
    %c0_i32 = arith.constant 0 : i32
    %c0_i32_0 = arith.constant 0 : i32
    %c0_i32_1 = arith.constant 0 : i32
    return %c0_i32, %c0_i32_0 : i32, i32
  }
  func.func @transform_2(%arg0: i32) -> (i32, i32) {
    %c0_i32 = arith.constant 0 : i32
    %c0_i32_0 = arith.constant 0 : i32
    %c0_i32_1 = arith.constant 0 : i32
    return %c0_i32, %c0_i32_0 : i32, i32
  }
  func.func @transform_3(%arg0: i32) -> (i32, i32) {
    %c0_i32 = arith.constant 0 : i32
    %c0_i32_0 = arith.constant 0 : i32
    %c0_i32_1 = arith.constant 0 : i32
    return %c0_i32, %c0_i32_0 : i32, i32
  }
  func.func @transform_4(%arg0: i32) -> (i32, i32) {
    %c0_i32 = arith.constant 0 : i32
    %c0_i32_0 = arith.constant 0 : i32
    %c0_i32_1 = arith.constant 0 : i32
    return %c0_i32, %c0_i32_0 : i32, i32
  }
  func.func @transform_5(%arg0: i32) -> (i32, i32) {
    %c0_i32 = arith.constant 0 : i32
    %c0_i32_0 = arith.constant 0 : i32
    %c0_i32_1 = arith.constant 0 : i32
    return %c0_i32, %c0_i32_0 : i32, i32
  }
  func.func @transform_6(%arg0: i32) -> (i32, i32) {
    %c0_i32 = arith.constant 0 : i32
    %c0_i32_0 = arith.constant 0 : i32
    %c0_i32_1 = arith.constant 0 : i32
    return %c0_i32, %c0_i32_0 : i32, i32
  }
  func.func @transform_7(%arg0: i32) -> (i32, i32) {
    %c0_i32 = arith.constant 0 : i32
    %c0_i32_0 = arith.constant 0 : i32
    return %arg0, %c0_i32 : i32, i32
  }
}

</mosaic_0001>

<bundles_post_ra>
// kernel: mlp_alpha_forward.1
= control target key start
LH: loop header
LB: loop body
LE: loop exit
PB: predicated region body
PF: predicated region fallthrough
CT: control target
= control target key end

     0   :  { %s3426_s24 = smov 0   ;;  %s4771_s0 = inlined_call_operand.vmem [shape: bf16[384,784], index: 0, kind: input, shape index: {}]   ;;  %s4772_s1 = inlined_call_operand.vmem [shape: bf16[784,256], index: 1, kind: input, shape index: {}]   ;;  %s4773_s2 = inlined_call_operand.vmem [shape: f32[1,256], index: 2, kind: input, shape index: {}]   ;;  %s4774_s3 = inlined_call_operand.vmem [shape: bf16[256,128], index: 3, kind: input, shape index: {}]   ;;  %s4775_s4 = inlined_call_operand.vmem [shape: f32[1,128], index: 4, kind: input, shape index: {}]   ;;  %s4776_s5 = inlined_call_operand.vmem [shape: bf16[128,128], index: 5, kind: input, shape index: {}]   ;;  %s4777_s6 = inlined_call_operand.vmem [shape: f32[1,128], index: 6, kind: input, shape index: {}]   ;;  %s4778_s7 = inlined_call_operand.vmem [shape: f32[384,128], index: 7, kind: output, shape index: {}]  }
   0x1 LB: > { %s2426_s25 = sadd.s32 4294967295, %s3384_s24   ;;  %p2430_p0 = scmp.ge.s32.totalorder %s3384_s24, 1  ;;  %s3384_s24 = sphi %s3426_s24, %s17_s24  }
   0x2   : > { %p239_p1 = scmp.lt.s32.totalorder %s3384_s24, 4 }
   0x4   : > { %p240_p2 = pnand %p2430_p0, %p239_p1 }
   0x6   : > { %243 = sbr.rel (%p240_p2) target bundleno = 996 (0x3e4), region = 48 }
   0xb   : > { %v2717_v0 = vld [vmem:[%s4772_s1 + $0x70] sm:$0xf]  ;;  %v3236_v1 = vld [vmem:[%s4772_s1 + $0x74] sm:$0xf0]  ;;  %v2709_v2 = vld [vmem:[%s4772_s1 + $0x60] sm:$0xf] }
   0xc   : > { %v2718_v3 = vor.u32 %v3236_v1, %v2717_v0  ;;  %v3234_v4 = vld [vmem:[%s4772_s1 + $0x64] sm:$0xf0]  ;;  %v2701_v6 = vld [vmem:[%s4772_s1 + $0x50] sm:$0xf]  ;;  %v3232_v7 = vld [vmem:[%s4772_s1 + $0x54] sm:$0xf0] }
   0xd   : > { %v2710_v5 = vor.u32 %v3234_v4, %v2709_v2  ;;  %v2702_v8 = vor.u32 %v3232_v7, %v2701_v6  ;;  %v2693_v9 = vld [vmem:[%s4772_s1 + $0x40] sm:$0xf]  ;;  %v3230_v10 = vld [vmem:[%s4772_s1 + $0x44] sm:$0xf0]  ;;  %s2431_s19 = sshll.u32 %s2426_s25, 4  ;;  %vm1224_vm0 = vcmask 130048  }
   0xe   : > { %3343 = vmatpush.bf16.msra.mxu1 %v2718_v3  ;;  %3344 = vmatpush.bf16.msra.mxu2 %v2718_v3  ;;  %v2694_v11 = vor.u32 %v3230_v10, %v2693_v9  ;;  %p273_p3 = scmp.lt.s32.totalorder %s2431_s19, 47  ;;  %v2685_v12 = vld [vmem:[%s4772_s1 + $0x30] sm:$0xf]  ;;  %v3228_v13 = vld [vmem:[%s4772_s1 + $0x34] sm:$0xf0] }
   0xf   : > { %3345 = vmatpush.bf16.msra.mxu3 %v2718_v3  ;;  %1249 = vmatpush.bf16.msra.mxu0 %v2718_v3  ;;  %v2686_v14 = vor.u32 %v3228_v13, %v2685_v12  ;;  %v2677_v15 = vld [vmem:[%s4772_s1 + $0x20] sm:$0xf]  ;;  %v3226_v16 = vld [vmem:[%s4772_s1 + $0x24] sm:$0xf0]  ;;  %v2669_v18 = vld [vmem:[%s4772_s1 + $0x10] sm:$0xf] }
  0x10   : > { %s4822_s19 = smov (!%p273_p3, %s2431_s19), 47  ;;  %v2678_v17 = vor.u32 %v3226_v16, %v2677_v15  ;;  %v3224_v19 = vld [vmem:[%s4772_s1 + $0x14] sm:$0xf0]  ;;  %v2661_v21 = vld [vmem:[%s4772_s1] sm:$0xf] }
  0x11   : > { %s3367_s29 = smul.u32 28, %s4822_s19  ;;  %v2670_v20 = vor.u32 %v3224_v19, %v2669_v18  ;;  %v3222_v22 = vld [vmem:[%s4772_s1 + $0x4] sm:$0xf0]  ;;  %v2781_v23 = vld [vmem:[%s4772_s1 + $0xf0] sm:$0xf] }
  0x12   : > { %3346 = vmatpush.bf16.msra.mxu1 %v2710_v5  ;;  %3347 = vmatpush.bf16.msra.mxu2 %v2710_v5  ;;  %v3252_v24 = vld [vmem:[%s4772_s1 + $0xf4] sm:$0xf0]  ;;  %v2845_v25 = vld [vmem:[%s4772_s1 + $0x170] sm:$0xf]  ;;  %v2662_v30 = vor.u32 %v3222_v22, %v2661_v21  ;;  %v2773_v34 = vld [vmem:[%s4772_s1 + $0xe0] sm:$0xf] }
  0x13   : > { %3348 = vmatpush.bf16.msra.mxu3 %v2710_v5  ;;  %1250 = vmatpush.bf16.msra.mxu0 %v2710_v5  ;;  %s3482_s13 = scalar_lea.vmem %s4771_s0, %s3367_s29  ;;  %v3268_v26 = vld [vmem:[%s4772_s1 + $0x174] sm:$0xf0]  ;;  %v2909_v28 = vld [vmem:[%s4772_s1 + $0x1f0] sm:$0xf]  ;;  %v2782_v35 = vor.u32 %v3252_v24, %v2781_v23  ;;  %v3250_v38 = vld [vmem:[%s4772_s1 + $0xe4] sm:$0xf0] }
  0x14   : > { %v2493_v27 = vld [vmem:[%s3482_s13 + $0x70] sm:$0xf]  ;;  %v3284_v29 = vld [vmem:[%s4772_s1 + $0x1f4] sm:$0xf0]  ;;  %v3182_v31 = vld [vmem:[%s3482_s13 + $0x88] sm:$0xf0]  ;;  %v2846_v39 = vor.u32 %v3268_v26, %v2845_v25  ;;  %v2774_v52 = vor.u32 %v3250_v38, %v2773_v34 }
  0x15   : > { %v2549_v32 = vld [vmem:[%s3482_s13 + $0xe0] sm:$0xf]  ;;  %v3196_v33 = vld [vmem:[%s3482_s13 + $0xf8] sm:$0xf0]  ;;  %v2605_v36 = vld [vmem:[%s3482_s13 + $0x150] sm:$0xf]  ;;  %v2910_v40 = vor.u32 %v3284_v29, %v2909_v28  ;;  %v3529_v44 = vor.u32 %v3182_v31, %v2493_v27 }
  0x16   : > { %3349 = vmatpush.bf16.msra.mxu1 %v2702_v8  ;;  %3350 = vmatpush.bf16.msra.mxu2 %v2702_v8  ;;  %v3210_v37 = vld [vmem:[%s3482_s13 + $0x168] sm:$0xf0]  ;;  %v2837_v41 = vld [vmem:[%s4772_s1 + $0x160] sm:$0xf]  ;;  %v2973_v42 = vld [vmem:[%s4772_s1 + $0x270] sm:$0xf]  ;;  %v3531_v45 = vor.u32 %v3196_v33, %v2549_v32 }
  0x17   : > { %3351 = vmatpush.bf16.msra.mxu3 %v2702_v8  ;;  %1251 = vmatpush.bf16.msra.mxu0 %v2702_v8  ;;  %v3300_v43 = vld [vmem:[%s4772_s1 + $0x274] sm:$0xf0]  ;;  %v3266_v46 = vld [vmem:[%s4772_s1 + $0x164] sm:$0xf0]  ;;  %v2901_v47 = vld [vmem:[%s4772_s1 + $0x1e0] sm:$0xf]  ;;  %v3542_v49 = vor.u32 %v3210_v37, %v2605_v36 }
  0x18   : > { %v3282_v48 = vld [vmem:[%s4772_s1 + $0x1e4] sm:$0xf0]  ;;  %v2437_v50 = vld [vmem:[%s3482_s13] sm:$0xf]  ;;  %v3168_v51 = vld [vmem:[%s3482_s13 + $0x18] sm:$0xf0]  ;;  %v2974_v55 = vor.u32 %v3300_v43, %v2973_v42  ;;  %v2838_v56 = vor.u32 %v3266_v46, %v2837_v41 }
  0x19   : > { %v2765_v53 = vld [vmem:[%s4772_s1 + $0xd0] sm:$0xf]  ;;  %v3248_v54 = vld [vmem:[%s4772_s1 + $0xd4] sm:$0xf0]  ;;  %v2902_v57 = vor.u32 %v3282_v48, %v2901_v47  ;;  %v2965_v59 = vld [vmem:[%s4772_s1 + $0x260] sm:$0xf]  ;;  %v3566_v62 = vor.u32 %v3168_v51, %v2437_v50 }
  0x1a   : > { %3352 = vmatpush.bf16.msra.mxu1 %v2694_v11  ;;  %3353 = vmatpush.bf16.msra.mxu2 %v2694_v11  ;;  %v2829_v58 = vld [vmem:[%s4772_s1 + $0x150] sm:$0xf]  ;;  %v3298_v60 = vld [vmem:[%s4772_s1 + $0x264] sm:$0xf0]  ;;  %v3264_v61 = vld [vmem:[%s4772_s1 + $0x154] sm:$0xf0]  ;;  %v2766_v2 = vor.u32 %v3248_v54, %v2765_v53 }
  0x1b   : > { %3354 = vmatpush.bf16.msra.mxu3 %v2694_v11  ;;  %1252 = vmatpush.bf16.msra.mxu0 %v2694_v11  ;;  %v2893_v63 = vld [vmem:[%s4772_s1 + $0x1d0] sm:$0xf]  ;;  %v3280_v0 = vld [vmem:[%s4772_s1 + $0x1d4] sm:$0xf0]  ;;  %v2757_v1 = vld [vmem:[%s4772_s1 + $0xc0] sm:$0xf]  ;;  %v2966_v5 = vor.u32 %v3298_v60, %v2965_v59  ;;  %v2830_v6 = vor.u32 %v3264_v61, %v2829_v58 }
  0x1c   : > { %v3246_v3 = vld [vmem:[%s4772_s1 + $0xc4] sm:$0xf0]  ;;  %v2821_v4 = vld [vmem:[%s4772_s1 + $0x140] sm:$0xf]  ;;  %v2894_v7 = vor.u32 %v3280_v0, %v2893_v63  ;;  %v2957_v8 = vld [vmem:[%s4772_s1 + $0x250] sm:$0xf] }
  0x1d   : > { %v3296_v9 = vld [vmem:[%s4772_s1 + $0x254] sm:$0xf0]  ;;  %v3262_v10 = vld [vmem:[%s4772_s1 + $0x144] sm:$0xf0]  ;;  %v2885_v11 = vld [vmem:[%s4772_s1 + $0x1c0] sm:$0xf]  ;;  %v2758_v13 = vor.u32 %v3246_v3, %v2757_v1 }
  0x1e   : > { %3355 = vmatpush.bf16.msra.mxu1 %v2686_v14  ;;  %3356 = vmatpush.bf16.msra.mxu2 %v2686_v14  ;;  %v3278_v12 = vld [vmem:[%s4772_s1 + $0x1c4] sm:$0xf0]  ;;  %v3244_v15 = vld [vmem:[%s4772_s1 + $0xb4] sm:$0xf0]  ;;  %v2958_v16 = vor.u32 %v3296_v9, %v2957_v8  ;;  %v2813_v21 = vld [vmem:[%s4772_s1 + $0x130] sm:$0xf] }
  0x1f   : > { %3357 = vmatpush.bf16.msra.mxu3 %v2686_v14  ;;  %1253 = vmatpush.bf16.msra.mxu0 %v2686_v14  ;;  %v2749_v14 = vld [vmem:[%s4772_s1 + $0xb0] sm:$0xf]  ;;  %v2886_v18 = vor.u32 %v3278_v12, %v2885_v11  ;;  %v2521_v19 = vld [vmem:[%s3482_s13 + $0xa8] sm:$0xf]  ;;  %v2949_v22 = vld [vmem:[%s4772_s1 + $0x240] sm:$0xf] }
  0x20   : > { %v3294_v23 = vld [vmem:[%s4772_s1 + $0x244] sm:$0xf0]  ;;  %v3260_v24 = vld [vmem:[%s4772_s1 + $0x134] sm:$0xf0]  ;;  %v2877_v25 = vld [vmem:[%s4772_s1 + $0x1b0] sm:$0xf] }
  0x21   : > { %v3276_v26 = vld [vmem:[%s4772_s1 + $0x1b4] sm:$0xf0]  ;;  %v3203_v28 = vld [vmem:[%s3482_s13 + $0x130] sm:$0xf0]  ;;  %v2633_v29 = vld [vmem:[%s3482_s13 + $0x188] sm:$0xf]  ;;  %v2950_v34 = vor.u32 %v3294_v23, %v2949_v22 }
  0x22   : > { %3358 = vmatpush.bf16.msra.mxu1 %v2678_v17  ;;  %3359 = vmatpush.bf16.msra.mxu2 %v2678_v17  ;;  %v2577_v27 = vld [vmem:[%s3482_s13 + $0x118] sm:$0xf]  ;;  %v3217_v31 = vld [vmem:[%s3482_s13 + $0x1a0] sm:$0xf0]  ;;  %v2741_v32 = vld [vmem:[%s4772_s1 + $0xa0] sm:$0xf]  ;;  %v2878_v36 = vor.u32 %v3276_v26, %v2877_v25 }
  0x23   : > { %3360 = vmatpush.bf16.msra.mxu3 %v2678_v17  ;;  %1254 = vmatpush.bf16.msra.mxu0 %v2678_v17  ;;  %v2822_v17 = vor.u32 %v3262_v10, %v2821_v4  ;;  %v3242_v33 = vld [vmem:[%s4772_s1 + $0xa4] sm:$0xf0]  ;;  %v2805_v37 = vld [vmem:[%s4772_s1 + $0x120] sm:$0xf]  ;;  %v2941_v38 = vld [vmem:[%s4772_s1 + $0x230] sm:$0xf]  ;;  %v3647_v41 = vor.u32 %v3203_v28, %v2577_v27  ;;  %v3658_v47 = vor.u32 %v3217_v31, %v2633_v29 }
  0x24   : > { %v3258_v42 = vld [vmem:[%s4772_s1 + $0x124] sm:$0xf0]  ;;  %v2869_v43 = vld [vmem:[%s4772_s1 + $0x1a0] sm:$0xf]  ;;  %v2465_v48 = vld [vmem:[%s3482_s13 + $0x38] sm:$0xf]  ;;  %v2742_v51 = vor.u32 %v3242_v33, %v2741_v32 }
  0x25   : > { %v3274_v46 = vld [vmem:[%s4772_s1 + $0x1a4] sm:$0xf0]  ;;  %v3175_v50 = vld [vmem:[%s3482_s13 + $0x50] sm:$0xf0]  ;;  %v3240_v53 = vld [vmem:[%s4772_s1 + $0x94] sm:$0xf0] }
  0x26   : > { %3361 = vmatpush.bf16.msra.mxu1 %v2670_v20  ;;  %3362 = vmatpush.bf16.msra.mxu2 %v2670_v20  ;;  %v2933_v58 = vld [vmem:[%s4772_s1 + $0x220] sm:$0xf]  ;;  %v3290_v59 = vld [vmem:[%s4772_s1 + $0x224] sm:$0xf0]  ;;  %v3256_v60 = vld [vmem:[%s4772_s1 + $0x114] sm:$0xf0]  ;;  %v3682_v61 = vor.u32 %v3175_v50, %v2465_v48 }
  0x27   : > { %3363 = vmatpush.bf16.msra.mxu3 %v2670_v20  ;;  %1255 = vmatpush.bf16.msra.mxu0 %v2670_v20  ;;  %v3189_v20 = vld [vmem:[%s3482_s13 + $0xc0] sm:$0xf0]  ;;  %v2861_v63 = vld [vmem:[%s4772_s1 + $0x190] sm:$0xf]  ;;  %v3272_v0 = vld [vmem:[%s4772_s1 + $0x194] sm:$0xf0]  ;;  %v2934_v4 = vor.u32 %v3290_v59, %v2933_v58 }
  0x28   : > { %v3238_v3 = vld [vmem:[%s4772_s1 + $0x84] sm:$0xf0]  ;;  %v2925_v8 = vld [vmem:[%s4772_s1 + $0x210] sm:$0xf]  ;;  %v3288_v9 = vld [vmem:[%s4772_s1 + $0x214] sm:$0xf0] }
  0x29   : > { %v3254_v10 = vld [vmem:[%s4772_s1 + $0x104] sm:$0xf0]  ;;  %v2853_v11 = vld [vmem:[%s4772_s1 + $0x180] sm:$0xf]  ;;  %v3169_v25 = vld [vmem:[%s3482_s13 + $0x20] sm:$0xf0] }
  0x2a   : > { %3364 = vmatpush.bf16.msra.mxu1 %v2662_v30  ;;  %3365 = vmatpush.bf16.msra.mxu2 %v2662_v30  ;;  %v3270_v12 = vld [vmem:[%s4772_s1 + $0x184] sm:$0xf0]  ;;  %v2439_v22 = vld [vmem:[%s3482_s13 + $0x1c] sm:$0xf0]  ;;  %v3166_v26 = vld [vmem:[%s3482_s13 + $0xc] sm:$0xf] }
  0x2b   : > { %3366 = vmatpush.bf16.msra.mxu3 %v2662_v30  ;;  %1256 = vmatpush.bf16.msra.mxu0 %v2662_v30  ;;  %v2750_v30 = vor.u32 %v3244_v15, %v2749_v14  ;;  %v3316_v14 = vld [vmem:[%s4772_s1 + $0x2f4] sm:$0xf0]  ;;  %v2447_v27 = vld [vmem:[%s3482_s13 + $0x24] sm:$0xf0]  ;;  %v3029_v29 = vld [vmem:[%s4772_s1 + $0x2e0] sm:$0xf] }
  0x2c   : > { %v3744_v33 = vor.u32 %v3166_v26, %v2447_v27  ;;  %v2473_v48 = vld [vmem:[%s3482_s13 + $0x40] sm:$0xf]  ;;  %v3176_v50 = vld [vmem:[%s3482_s13 + $0x58] sm:$0xf0]  ;;  %s2434_s29 = sshll.u32 %s4822_s19, 3 }
  0x2d   : > { %1267 = vmatmul.bf16.vlgmr.msra.gmra.mxu1 %v3529_v44  ;;  %1277 = vmatmul.bf16.vlgmr.msra.gmra.mxu2 %v3531_v45  ;;  %v3013_v59 = vld [vmem:[%s4772_s1 + $0x2c0] sm:$0xf]  ;;  %s4750_s11 = scalar_lea.vmem %s4778_s7, %s2434_s29 }
  0x2e   : > { %1298 = vmatpush.bf16.msrb.mxu1 %v2782_v35  ;;  %1347 = vmatpush.bf16.msrb.mxu2 %v2846_v39  ;;  %v2814_v35 = vor.u32 %v3260_v24, %v2813_v21  ;;  %v3292_v39 = vld [vmem:[%s4772_s1 + $0x234] sm:$0xf0]  ;;  %v3165_v21 = vld [vmem:[%s3482_s13 + $0x4] sm:$0xf]  ;;  %v2445_v24 = vld [vmem:[%s3482_s13 + $0x8] sm:$0xf] }
  0x2f   : > { %1396 = vmatpush.bf16.msrb.mxu3 %v2910_v40  ;;  %1445 = vmatpush.bf16.msrb.mxu0 %v2974_v55  ;;  %v3645_v40 = vor.u32 %v3189_v20, %v2521_v19  ;;  %v2942_v54 = vor.u32 %v3292_v39, %v2941_v38  ;;  %v2806_v55 = vor.u32 %v3258_v42, %v2805_v37  ;;  %v2917_v19 = vld [vmem:[%s4772_s1 + $0x200] sm:$0xf]  ;;  %v3286_v20 = vld [vmem:[%s4772_s1 + $0x204] sm:$0xf0]  ;;  %v3021_v38 = vld [vmem:[%s4772_s1 + $0x2d0] sm:$0xf] }
  0x30   : > { %1287 = vmatmul.bf16.vlgmr.msra.gmra.mxu3 %v3542_v49  ;;  %1257 = vmatmul.bf16.vlgmr.msra.gmra.mxu0 %v3566_v62  ;;  %v2918_v28 = vor.u32 %v3286_v20, %v2917_v19  ;;  %v3740_v31 = vor.u32 %v3165_v21, %v2439_v22  ;;  %v3742_v32 = vor.u32 %v3169_v25, %v2445_v24  ;;  %v3312_v39 = vld [vmem:[%s4772_s1 + $0x2d4] sm:$0xf0]  ;;  %v3187_v19 = vld [vmem:[%s3482_s13 + $0xb4] sm:$0xf]  ;;  %v2531_v20 = vld [vmem:[%s3482_s13 + $0xcc] sm:$0xf0] }
  0x31   : > { %v3022_v42 = vor.u32 %v3312_v39, %v3021_v38  ;;  %v2537_v24 = vld [vmem:[%s3482_s13 + $0xb8] sm:$0xf]  ;;  %v3191_v25 = vld [vmem:[%s3482_s13 + $0xd0] sm:$0xf0]  ;;  %v2997_v27 = vld [vmem:[%s4772_s1 + $0x2a0] sm:$0xf] }
  0x32   : > { %1299 = vmatpush.bf16.msrb.mxu1 %v2774_v52  ;;  %1348 = vmatpush.bf16.msrb.mxu2 %v2838_v56  ;;  %v2733_v52 = vld [vmem:[%s4772_s1 + $0x90] sm:$0xf]  ;;  %v2870_v56 = vor.u32 %v3274_v46, %v2869_v43  ;;  %v3172_v43 = vld [vmem:[%s3482_s13 + $0x3c] sm:$0xf]  ;;  %v2467_v46 = vld [vmem:[%s3482_s13 + $0x54] sm:$0xf0]  ;;  %v3828_v26 = vor.u32 %v3191_v25, %v2537_v24 }
  0x33   : > { %1397 = vmatpush.bf16.msrb.mxu3 %v2902_v57  ;;  %1446 = vmatpush.bf16.msrb.mxu0 %v2966_v5  ;;  %v2797_v57 = vld [vmem:[%s4772_s1 + $0x110] sm:$0xf]  ;;  %v2734_v1 = vor.u32 %v3240_v53, %v2733_v52  ;;  %v2475_v52 = vld [vmem:[%s3482_s13 + $0x5c] sm:$0xf0]  ;;  %v3766_v53 = vor.u32 %v3172_v43, %v2467_v46  ;;  %v3194_v38 = vld [vmem:[%s3482_s13 + $0xec] sm:$0xf] }
  0x34   : > { %v2798_v5 = vor.u32 %v3256_v60, %v2797_v57  ;;  %v3177_v57 = vld [vmem:[%s3482_s13 + $0x60] sm:$0xf0]  ;;  %v3310_v60 = vld [vmem:[%s4772_s1 + $0x2c4] sm:$0xf0]  ;;  %v2695_v25 = vld [vmem:[%s4772_s1 + $0x48] sm:$0xf0] }
  0x35   : > { %v2559_v39 = vld [vmem:[%s3482_s13 + $0x104] sm:$0xf0]  ;;  %v3229_v24 = vld [vmem:[%s4772_s1 + $0x44] sm:$0xf] }
  0x36   : > { %1300 = vmatpush.bf16.msrb.mxu1 %v2766_v2  ;;  %1349 = vmatpush.bf16.msrb.mxu2 %v2830_v6  ;;  %v2725_v2 = vld [vmem:[%s4772_s1 + $0x80] sm:$0xf]  ;;  %v2862_v6 = vor.u32 %v3272_v0, %v2861_v63  ;;  %v3014_v63 = vor.u32 %v3310_v60, %v3013_v59  ;;  %v3179_v0 = vld [vmem:[%s3482_s13 + $0x74] sm:$0xf]  ;;  %v3848_v46 = vor.u32 %v3194_v38, %v2559_v39  ;;  %v2719_v60 = vld [vmem:[%s4772_s1 + $0x78] sm:$0xf0] }
  0x37   : > { %1398 = vmatpush.bf16.msrb.mxu3 %v2894_v7  ;;  %1447 = vmatpush.bf16.msrb.mxu0 %v2958_v16  ;;  %v2789_v7 = vld [vmem:[%s4772_s1 + $0x100] sm:$0xf]  ;;  %v2726_v15 = vor.u32 %v3238_v3, %v2725_v2  ;;  %v2926_v16 = vor.u32 %v3288_v9, %v2925_v8  ;;  %v2501_v2 = vld [vmem:[%s3482_s13 + $0x78] sm:$0xf]  ;;  %v3183_v3 = vld [vmem:[%s3482_s13 + $0x90] sm:$0xf0] }
  0x38   : > { %v2509_v9 = vld [vmem:[%s3482_s13 + $0x80] sm:$0xf]  ;;  %4794 = vst [vmem:[#allocation3_spill] sm:$0xff] %v3848_v46 }
  0x39   : > { %v2981_v39 = vld [vmem:[%s4772_s1 + $0x280] sm:$0xf] }
  0x3a   : > { %1301 = vmatpush.bf16.msrb.mxu1 %v2758_v13  ;;  %1350 = vmatpush.bf16.msrb.mxu2 %v2822_v17  ;;  %v3037_v13 = vld [vmem:[%s4772_s1 + $0x2f0] sm:$0xf]  ;;  %v2790_v17 = vor.u32 %v3254_v10, %v2789_v7  ;;  %v3794_v7 = vor.u32 %v3183_v3, %v2501_v2  ;;  %v3184_v10 = vld [vmem:[%s3482_s13 + $0x98] sm:$0xf0] }
  0x3b   : > { %1399 = vmatpush.bf16.msrb.mxu3 %v2886_v18  ;;  %1448 = vmatpush.bf16.msrb.mxu0 %v2950_v34  ;;  %v2854_v18 = vor.u32 %v3270_v12, %v2853_v11  ;;  %v3038_v23 = vor.u32 %v3316_v14, %v3037_v13  ;;  %v2453_v34 = vld [vmem:[%s3482_s13 + $0x10] sm:$0xf]  ;;  %v3802_v11 = vor.u32 %v3184_v10, %v2509_v9  ;;  %v3308_v13 = vld [vmem:[%s4772_s1 + $0x2b4] sm:$0xf0]  ;;  %v3200_v3 = vld [vmem:[%s3482_s13 + $0x11c] sm:$0xf] }
  0x3c   : > { %v3005_v12 = vld [vmem:[%s4772_s1 + $0x2b0] sm:$0xf]  ;;  %v2703_v9 = vld [vmem:[%s4772_s1 + $0x58] sm:$0xf0]  ;;  %v3251_v10 = vld [vmem:[%s4772_s1 + $0xf4] sm:$0xf] }
  0x3d   : > { %1272 = vmatmul.bf16.gmra.mxu1 %v3645_v40  ;;  %1282 = vmatmul.bf16.gmra.mxu2 %v3647_v41  ;;  %v3006_v14 = vor.u32 %v3308_v13, %v3005_v12  ;;  %v2585_v12 = vld [vmem:[%s3482_s13 + $0x120] sm:$0xf]  ;;  %v3204_v13 = vld [vmem:[%s3482_s13 + $0x138] sm:$0xf0] }
  0x3e   : > { %1302 = vmatpush.bf16.msrb.mxu1 %v2750_v30  ;;  %1351 = vmatpush.bf16.msrb.mxu2 %v2814_v35  ;;  %v3314_v30 = vld [vmem:[%s4772_s1 + $0x2e4] sm:$0xf0]  ;;  %v3170_v35 = vld [vmem:[%s3482_s13 + $0x28] sm:$0xf0] }
  0x3f   : > { %1400 = vmatpush.bf16.msrb.mxu3 %v2878_v36  ;;  %1449 = vmatpush.bf16.msrb.mxu0 %v2942_v54  ;;  %v3030_v36 = vor.u32 %v3314_v30, %v3029_v29  ;;  %v3750_v37 = vor.u32 %v3170_v35, %v2453_v34  ;;  %v3768_v54 = vor.u32 %v3176_v50, %v2473_v48  ;;  %v3193_v30 = vld [vmem:[%s3482_s13 + $0xe4] sm:$0xf]  ;;  %v2551_v34 = vld [vmem:[%s3482_s13 + $0xfc] sm:$0xf0]  ;;  %v2557_v35 = vld [vmem:[%s3482_s13 + $0xe8] sm:$0xf] }
  0x40   : > { %1292 = vmatmul.bf16.gmra.mxu3 %v3658_v47  ;;  %1262 = vmatmul.bf16.gmra.mxu0 %v3682_v61  ;;  %v2565_v48 = vld [vmem:[%s3482_s13 + $0xf0] sm:$0xf]  ;;  %v3198_v50 = vld [vmem:[%s3482_s13 + $0x108] sm:$0xf0] }
  0x42   : > { %1303 = vmatpush.bf16.msrb.mxu1 %v2742_v51  ;;  %1352 = vmatpush.bf16.msrb.mxu2 %v2806_v55  ;;  %v3173_v51 = vld [vmem:[%s3482_s13 + $0x44] sm:$0xf] }
  0x43   : > { %1401 = vmatpush.bf16.msrb.mxu3 %v2870_v56  ;;  %1450 = vmatpush.bf16.msrb.mxu0 %v2934_v4  ;;  %v3770_v55 = vor.u32 %v3173_v51, %v2475_v52  ;;  %v2481_v56 = vld [vmem:[%s3482_s13 + $0x48] sm:$0xf]  ;;  %v3180_v4 = vld [vmem:[%s3482_s13 + $0x7c] sm:$0xf]  ;;  %v3854_v51 = vor.u32 %v3198_v50, %v2565_v48  ;;  %v2989_v52 = vld [vmem:[%s4772_s1 + $0x290] sm:$0xf] }
  0x44   : > { %v3776_v58 = vor.u32 %v3177_v57, %v2481_v56  ;;  %v3304_v56 = vld [vmem:[%s4772_s1 + $0x294] sm:$0xf0]  ;;  %v3235_v57 = vld [vmem:[%s4772_s1 + $0x74] sm:$0xf]  ;;  %v3302_v48 = vld [vmem:[%s4772_s1 + $0x284] sm:$0xf0] }
  0x45   : > { %4795 = vst [vmem:[#allocation4_spill] sm:$0xff] %v3854_v51  ;;  %v2990_v59 = vor.u32 %v3304_v56, %v2989_v52  ;;  %v3227_v50 = vld [vmem:[%s4772_s1 + $0x34] sm:$0xf]  ;;  %v2982_v52 = vor.u32 %v3302_v48, %v2981_v39  ;;  %v2687_v56 = vld [vmem:[%s4772_s1 + $0x38] sm:$0xf0] }
  0x46   : > { %1304 = vmatpush.bf16.msrb.mxu1 %v2734_v1  ;;  %1353 = vmatpush.bf16.msrb.mxu2 %v2798_v5  ;;  %v2495_v1 = vld [vmem:[%s3482_s13 + $0x8c] sm:$0xf0]  ;;  %v2503_v5 = vld [vmem:[%s3482_s13 + $0x94] sm:$0xf0]  ;;  %v3221_v39 = vld [vmem:[%s4772_s1 + $0x4] sm:$0xf] }
  0x47   : > { %1402 = vmatpush.bf16.msrb.mxu3 %v2862_v6  ;;  %1451 = vmatpush.bf16.msrb.mxu0 %v2926_v16  ;;  %v3792_v6 = vor.u32 %v3179_v0, %v2495_v1  ;;  %v3796_v8 = vor.u32 %v3180_v4, %v2503_v5  ;;  %v2523_v16 = vld [vmem:[%s3482_s13 + $0xc4] sm:$0xf0]  ;;  %v3233_v0 = vld [vmem:[%s4772_s1 + $0x64] sm:$0xf]  ;;  %v2711_v1 = vld [vmem:[%s4772_s1 + $0x68] sm:$0xf0] }
  0x48   : > { %v2714_v2 = vor.u32 %v3233_v0, %v2711_v1  ;;  %v2579_v4 = vld [vmem:[%s3482_s13 + $0x134] sm:$0xf0]  ;;  %v3231_v5 = vld [vmem:[%s4772_s1 + $0x54] sm:$0xf]  ;;  %v3045_v0 = vld [vmem:[%s4772_s1 + $0x300] sm:$0xf] }
  0x49   : > { %v3318_v1 = vld [vmem:[%s4772_s1 + $0x304] sm:$0xf0]  ;;  %v2663_v48 = vld [vmem:[%s4772_s1 + $0x8] sm:$0xf0] }
  0x4a   : > { %1305 = vmatpush.bf16.msrb.mxu1 %v2726_v15  ;;  %1354 = vmatpush.bf16.msrb.mxu2 %v2790_v17  ;;  %v3186_v15 = vld [vmem:[%s3482_s13 + $0xac] sm:$0xf]  ;;  %v2529_v17 = vld [vmem:[%s3482_s13 + $0xb0] sm:$0xf] }
  0x4b   : > { %1403 = vmatpush.bf16.msrb.mxu3 %v2854_v18  ;;  %1452 = vmatpush.bf16.msrb.mxu0 %v2918_v28  ;;  %v3190_v18 = vld [vmem:[%s3482_s13 + $0xc8] sm:$0xf0]  ;;  %v3818_v21 = vor.u32 %v3186_v15, %v2523_v16  ;;  %v3306_v28 = vld [vmem:[%s4772_s1 + $0x2a4] sm:$0xf0]  ;;  %v2783_v15 = vld [vmem:[%s4772_s1 + $0xf8] sm:$0xf0] }
  0x4c   : > { %v3820_v22 = vor.u32 %v3190_v18, %v2529_v17  ;;  %v2998_v29 = vor.u32 %v3306_v28, %v2997_v27  ;;  %v3201_v16 = vld [vmem:[%s3482_s13 + $0x124] sm:$0xf]  ;;  %v2587_v17 = vld [vmem:[%s3482_s13 + $0x13c] sm:$0xf0]  ;;  %v2786_v18 = vor.u32 %v3251_v10, %v2783_v15  ;;  %v3223_v15 = vld [vmem:[%s4772_s1 + $0x14] sm:$0xf] }
  0x4d   : > { %1306 = vmatmul.bf16.vlgmr.msrb.gmra.mxu1 %v3740_v31  ;;  %1355 = vmatmul.bf16.vlgmr.msrb.gmra.mxu2 %v3742_v32  ;;  %v3249_v27 = vld [vmem:[%s4772_s1 + $0xe4] sm:$0xf]  ;;  %v3907_v28 = vor.u32 %v3201_v16, %v2587_v17  ;;  %v2671_v16 = vld [vmem:[%s4772_s1 + $0x18] sm:$0xf0]  ;;  %v3243_v17 = vld [vmem:[%s4772_s1 + $0xb4] sm:$0xf] }
  0x4e   : > { %1494 = vmatpush.bf16.msra.mxu1 %v3038_v23  ;;  %v3822_v23 = vor.u32 %v3187_v19, %v2531_v20  ;;  %v3894_v19 = vor.u32 %v3200_v3, %v2579_v4  ;;  %v3896_v20 = vor.u32 %v3204_v13, %v2585_v12  ;;  %v3046_v3 = vor.u32 %v3318_v1, %v3045_v0  ;;  %v2679_v4 = vld [vmem:[%s4772_s1 + $0x28] sm:$0xf0]  ;;  %v3207_v13 = vld [vmem:[%s3482_s13 + $0x154] sm:$0xf]  ;;  %v3999_v1 = vld [vmem:[%s4773_s2] sm:$0x3] }
  0x4f   : > { %1641 = vmatpush.bf16.msra.mxu0 %v2786_v18  ;;  %4797 = vst [vmem:[#allocation6_spill] sm:$0xff] %v3907_v28  ;;  %v2613_v18 = vld [vmem:[%s3482_s13 + $0x158] sm:$0xf] }
  0x50   : > { %1404 = vmatmul.bf16.vlgmr.msrb.gmra.mxu3 %v3744_v33  ;;  %1453 = vmatmul.bf16.vlgmr.msrb.gmra.mxu0 %v3750_v37  ;;  %4796 = vst [vmem:[#allocation5_spill] sm:$0xff] %v3896_v20 }
  0x51   : > { %1550 = vmatpush.bf16.msra.mxu2 %v3046_v3  ;;  %v3267_v3 = vld [vmem:[%s4772_s1 + $0x174] sm:$0xf] }
  0x52   : > { %1495 = vmatpush.bf16.msra.mxu1 %v3030_v36  ;;  %v3197_v36 = vld [vmem:[%s3482_s13 + $0x100] sm:$0xf0] }
  0x53   : > { %v3846_v43 = vor.u32 %v3197_v36, %v2557_v35  ;;  %v2698_v35 = vor.u32 %v3229_v24, %v2695_v25  ;;  %v3211_v24 = vld [vmem:[%s3482_s13 + $0x170] sm:$0xf0]  ;;  %v2751_v25 = vld [vmem:[%s4772_s1 + $0xb8] sm:$0xf0] }
  0x55   : > { %4793 = vst [vmem:[#allocation2_spill] sm:$0xff] %v3846_v43 }
  0x56   : > { %1496 = vmatpush.bf16.msra.mxu1 %v3022_v42  ;;  %v3844_v42 = vor.u32 %v3193_v30, %v2551_v34  ;;  %v3205_v30 = vld [vmem:[%s3482_s13 + $0x140] sm:$0xf0]  ;;  %v2775_v34 = vld [vmem:[%s4772_s1 + $0xe8] sm:$0xf0] }
  0x57   : > { %v2778_v36 = vor.u32 %v3249_v27, %v2775_v34  ;;  %v3208_v27 = vld [vmem:[%s3482_s13 + $0x15c] sm:$0xf]  ;;  %v2754_v34 = vor.u32 %v3243_v17, %v2751_v25 }
  0x59   : > { %1642 = vmatpush.bf16.msra.mxu0 %v2778_v36  ;;  %v3976_v36 = vor.u32 %v3211_v24, %v2613_v18  ;;  %v3237_v18 = vld [vmem:[%s4772_s1 + $0x84] sm:$0xf]  ;;  %v2727_v24 = vld [vmem:[%s4772_s1 + $0x88] sm:$0xf0] }
  0x5a   : > { %1497 = vmatpush.bf16.msra.mxu1 %v3014_v63  ;;  %v2722_v63 = vor.u32 %v3235_v57, %v2719_v60  ;;  %v3247_v57 = vld [vmem:[%s4772_s1 + $0xd4] sm:$0xf]  ;;  %v2690_v60 = vor.u32 %v3227_v50, %v2687_v56  ;;  %v3241_v50 = vld [vmem:[%s4772_s1 + $0xa4] sm:$0xf] }
  0x5b   : > { %4799 = vst [vmem:[#allocation8_spill] sm:$0xff] %v3976_v36 }
  0x5c   : > { %1592 = vmatpush.bf16.msra.mxu3 %v2722_v63 }
  0x5d   : > { %1311 = vmatmul.bf16.gmra.mxu1 %v3766_v53  ;;  %1360 = vmatmul.bf16.gmra.mxu2 %v3768_v54 }
  0x5e   : > { %1498 = vmatpush.bf16.msra.mxu1 %v3006_v14  ;;  %v2706_v14 = vor.u32 %v3231_v5, %v2703_v9  ;;  %v3245_v5 = vld [vmem:[%s4772_s1 + $0xc4] sm:$0xf]  ;;  %v2759_v9 = vld [vmem:[%s4772_s1 + $0xc8] sm:$0xf0] }
  0x5f   : > { %v2762_v12 = vor.u32 %v3245_v5, %v2759_v9  ;;  %v3239_v5 = vld [vmem:[%s4772_s1 + $0x94] sm:$0xf] }
  0x60   : > { %1409 = vmatmul.bf16.gmra.mxu3 %v3770_v55  ;;  %1458 = vmatmul.bf16.gmra.mxu0 %v3776_v58 }
  0x61   : > { %1593 = vmatpush.bf16.msra.mxu3 %v2714_v2  ;;  %v3225_v2 = vld [vmem:[%s4772_s1 + $0x24] sm:$0xf] }
  0x62   : > { %1499 = vmatpush.bf16.msra.mxu1 %v2998_v29  ;;  %v2593_v29 = vld [vmem:[%s3482_s13 + $0x128] sm:$0xf]  ;;  %v2682_v10 = vor.u32 %v3225_v2, %v2679_v4  ;;  %v2847_v4 = vld [vmem:[%s4772_s1 + $0x178] sm:$0xf0] }
  0x63   : > { %v3916_v38 = vor.u32 %v3205_v30, %v2593_v29  ;;  %v2615_v29 = vld [vmem:[%s3482_s13 + $0x174] sm:$0xf0]  ;;  %v2674_v30 = vor.u32 %v3223_v15, %v2671_v16 }
  0x64   : > { %v3989_v56 = vor.u32 %v3208_v27, %v2615_v29  ;;  %v2730_v29 = vor.u32 %v3237_v18, %v2727_v24  ;;  %v3265_v18 = vld [vmem:[%s4772_s1 + $0x164] sm:$0xf]  ;;  %v2839_v24 = vld [vmem:[%s4772_s1 + $0x168] sm:$0xf0] }
  0x65   : > { %1594 = vmatpush.bf16.msra.mxu3 %v2706_v14  ;;  %4798 = vst [vmem:[#allocation7_spill] sm:$0xff] %v3916_v38  ;;  %v2607_v14 = vld [vmem:[%s3482_s13 + $0x16c] sm:$0xf0] }
  0x66   : > { %1500 = vmatpush.bf16.msra.mxu1 %v2990_v59  ;;  %v2767_v59 = vld [vmem:[%s4772_s1 + $0xd8] sm:$0xf0]  ;;  %4800 = vst [vmem:[#allocation9_spill] sm:$0xff] %v3989_v56 }
  0x67   : > { %v2770_v63 = vor.u32 %v3247_v57, %v2767_v59  ;;  %v2621_v57 = vld [vmem:[%s3482_s13 + $0x160] sm:$0xf]  ;;  %v3212_v59 = vld [vmem:[%s3482_s13 + $0x178] sm:$0xf0] }
  0x68   : > { %v4003_v2 = vor.u32 %v3212_v59, %v2621_v57  ;;  %v3215_v57 = vld [vmem:[%s3482_s13 + $0x194] sm:$0xf]  ;;  %v2643_v59 = vld [vmem:[%s3482_s13 + $0x1ac] sm:$0xf0] }
  0x69   : > { %1595 = vmatpush.bf16.msra.mxu3 %v2698_v35  ;;  %1643 = vmatpush.bf16.msra.mxu0 %v2770_v63  ;;  %v3974_v35 = vor.u32 %v3207_v13, %v2607_v14  ;;  %v2666_v63 = vor.u32 %v3221_v39, %v2663_v48  ;;  %v4019_v13 = vperm.slane %v3999_v1, 0  ;;  %v2635_v39 = vld [vmem:[%s3482_s13 + $0x1a4] sm:$0xf0]  ;;  %v2641_v48 = vld [vmem:[%s3482_s13 + $0x190] sm:$0xf] }
  0x6a   : > { %1501 = vmatpush.bf16.msra.mxu1 %v2982_v52  ;;  %4801 = vst [vmem:[#allocation10_spill] sm:$0xff] %v4003_v2 }
  0x6d   : > { %1316 = vmatmul.bf16.gmra.mxu1 %v3792_v6  ;;  %1365 = vmatmul.bf16.gmra.mxu2 %v3794_v7 }
  0x6e   : > { %1596 = vmatpush.bf16.msra.mxu3 %v2690_v60  ;;  %1644 = vmatpush.bf16.msra.mxu0 %v2762_v12  ;;  %v2743_v60 = vld [vmem:[%s4772_s1 + $0xa8] sm:$0xf0]  ;;  %v2735_v12 = vld [vmem:[%s4772_s1 + $0x98] sm:$0xf0] }
  0x6f   : > { %v2746_v0 = vor.u32 %v3241_v50, %v2743_v60  ;;  %v2738_v14 = vor.u32 %v3239_v5, %v2735_v12  ;;  %v3218_v50 = vld [vmem:[%s3482_s13 + $0x1a8] sm:$0xf0]  ;;  %v4054_v12 = vor.u32 %v3215_v57, %v2643_v59 }
  0x70   : > { %1414 = vmatmul.bf16.gmra.mxu3 %v3796_v8  ;;  %1463 = vmatmul.bf16.gmra.mxu0 %v3802_v11 }
  0x71   : > { %4803 = vst [vmem:[#allocation12_spill] sm:$0xff] %v4054_v12 }
  0x72   : > { %1597 = vmatpush.bf16.msra.mxu3 %v2682_v10  ;;  %1645 = vmatpush.bf16.msra.mxu0 %v2754_v34  ;;  %v2850_v10 = vor.u32 %v3267_v3, %v2847_v4  ;;  %v4047_v4 = vor.u32 %v3218_v50, %v2641_v48 }
  0x74   : > { %1690 = vmatpush.bf16.msrb.mxu1 %v2850_v10  ;;  %4802 = vst [vmem:[#allocation11_spill] sm:$0xff] %v4047_v4 }
  0x76   : > { %1598 = vmatpush.bf16.msra.mxu3 %v2674_v30  ;;  %1646 = vmatpush.bf16.msra.mxu0 %v2746_v0  ;;  %v3214_v30 = vld [vmem:[%s3482_s13 + $0x18c] sm:$0xf] }
  0x77   : > { %v4045_v3 = vor.u32 %v3214_v30, %v2635_v39  ;;  %v2842_v30 = vor.u32 %v3265_v18, %v2839_v24 }
  0x79   : > { %1691 = vmatpush.bf16.msrb.mxu1 %v2842_v30 }
  0x7a   : > { %1599 = vmatpush.bf16.msra.mxu3 %v2666_v63  ;;  %1647 = vmatpush.bf16.msra.mxu0 %v2738_v14  ;;  %v2649_v14 = vld [vmem:[%s3482_s13 + $0x198] sm:$0xf] }
  0x7d   : > { %1321 = vmatmul.bf16.gmra.mxu1 %v3818_v21  ;;  %1370 = vmatmul.bf16.gmra.mxu2 %v3820_v22 }
  0x7e   : > { %1648 = vmatpush.bf16.msra.mxu0 %v2730_v29 }
  0x80   : > { %1419 = vmatmul.bf16.gmra.mxu3 %v3822_v23  ;;  %1468 = vmatmul.bf16.gmra.mxu0 %v3828_v26 }
  0x8d   : > { %1326 = vmatmul.bf16.gmra.mxu1 %v3844_v42  ;;  %1375 = vmatmul.bf16.gmra.mxu2 %v3846_v43 }
  0x90   : > { %1424 = vmatmul.bf16.gmra.mxu3 %v3848_v46  ;;  %1473 = vmatmul.bf16.gmra.mxu0 %v3854_v51  ;;  %v2489_v51 = vld [vmem:[%s3482_s13 + $0x50] sm:$0xf]  ;;  %v3178_v46 = vld [vmem:[%s3482_s13 + $0x68] sm:$0xf0] }
  0x9d   : > { %1331 = vmatmul.bf16.gmra.mxu1 %v3894_v19  ;;  %1380 = vmatmul.bf16.gmra.mxu2 %v3896_v20 }
  0xa0   : > { %1429 = vmatmul.bf16.gmra.mxu3 %v3907_v28  ;;  %1478 = vmatmul.bf16.gmra.mxu0 %v3916_v38  ;;  %v3174_v28 = vld [vmem:[%s3482_s13 + $0x4c] sm:$0xf] }
  0xaa   : > { %v3987_v52 = vpop.f32.mrf.mxu1 }
  0xad   : > { %1336 = vmatmul.bf16.gmra.mxu1 %v3974_v35  ;;  %1385 = vmatmul.bf16.gmra.mxu2 %v3976_v36  ;;  %v1258_v9 = vpop.f32.mrf.mxu0 }
  0xae   : > { %v1259_v18 = vadd.f32 %v1258_v9, %v4019_v13  ;;  %v3263_v9 = vld [vmem:[%s4772_s1 + $0x154] sm:$0xf] }
  0xb0   : > { %1434 = vmatmul.bf16.gmra.mxu3 %v3989_v56  ;;  %v1278_v15 = vpop.f32.mrf.mxu2  ;;  %1483 = vmatmul.bf16.gmra.mxu0 %v4003_v2 }
  0xb1   : > { %v4022_v16 = vadd.f32 %v1278_v15, %v4019_v13  ;;  %v3219_v15 = vld [vmem:[%s3482_s13 + $0x1b0] sm:$0xf0] }
  0xb2   : > { %v4031_v25 = vpop.f32.mrf.mxu1 }
  0xb3   : > { %v1288_v17 = vpop.f32.mrf.mxu3 }
  0xb4   : > { %v4034_v27 = vadd.f32 %v1288_v17, %v4019_v13  ;;  %v4060_v17 = vor.u32 %v3219_v15, %v2649_v14  ;;  %v2455_v14 = vld [vmem:[%s3482_s13 + $0x2c] sm:$0xf0]  ;;  %v2461_v15 = vld [vmem:[%s3482_s13 + $0x18] sm:$0xf] }
  0xb5   : > { %v1260_v34 = vpop.f32.mrf.mxu0 }
  0xb6   : > { %4804 = vst [vmem:[#allocation13_spill] sm:$0xff] %v4060_v17 }
  0xb8   : > { %v1280_v60 = vpop.f32.mrf.mxu2 }
  0xb9   : > { %v4043_v63 = vadd.f32 %v1280_v60, %v4019_v13  ;;  %v3167_v60 = vld [vmem:[%s3482_s13 + $0x14] sm:$0xf] }
  0xba   : > { %v4049_v5 = vpop.f32.mrf.mxu1 }
  0xbb   : > { %v1290_v0 = vpop.f32.mrf.mxu3 }
  0xbc   : > { %v4052_v10 = vadd.f32 %v1290_v0, %v4019_v13 }
  0xbd   : > { %1341 = vmatmul.bf16.gmra.mxu1 %v4045_v3  ;;  %1390 = vmatmul.bf16.gmra.mxu2 %v4047_v4  ;;  %v1263_v29 = vpop.f32.mrf.mxu0  ;;  %v4086_v4 = vor.u32 %v3167_v60, %v2455_v14 }
  0xc0   : > { %1439 = vmatmul.bf16.gmra.mxu3 %v4054_v12  ;;  %v1283_v39 = vpop.f32.mrf.mxu2  ;;  %1488 = vmatmul.bf16.gmra.mxu0 %v4060_v17  ;;  %v3171_v12 = vld [vmem:[%s3482_s13 + $0x30] sm:$0xf0] }
  0xc1   : > { %v4070_v48 = vadd.f32 %v1283_v39, %v4019_v13  ;;  %v4088_v17 = vor.u32 %v3171_v12, %v2461_v15  ;;  %v2831_v12 = vld [vmem:[%s4772_s1 + $0x158] sm:$0xf0]  ;;  %v1261_v15 = vadd.f32 %v1260_v34, %v4019_v13 }
  0xc2   : > { %v4073_v57 = vpop.f32.mrf.mxu1  ;;  %v2834_v14 = vor.u32 %v3263_v9, %v2831_v12  ;;  %v1264_v9 = vadd.f32 %v1263_v29, %v4019_v13 }
  0xc3   : > { %v1293_v50 = vpop.f32.mrf.mxu3  ;;  %4805 = vst [vmem:[#allocation14_spill] sm:$0xff] %v4088_v17 }
  0xc4   : > { %v4076_v59 = vadd.f32 %v1293_v50, %v4019_v13  ;;  %1692 = vmatpush.bf16.msrb.mxu1 %v2834_v14 }
  0xc5   : > { %v1265_v0 = vpop.f32.mrf.mxu0 }
  0xc8   : > { %v1285_v24 = vpop.f32.mrf.mxu2 }
  0xc9   : > { %v4084_v30 = vadd.f32 %v1285_v24, %v4019_v13 }
  0xca   : > { %v1307_v50 = vpop.f32.mrf.mxu1 }
  0xcb   : > { %v1295_v39 = vpop.f32.mrf.mxu3  ;;  %v1308_v56 = vadd.f32 %v1307_v50, %v1259_v18 }
  0xcc   : > { %v4091_v2 = vadd.f32 %v1295_v39, %v4019_v13 }
  0xcd   : > { %1502 = vmatmul.bf16.vlgmr.msra.gmra.mxu1 %v4086_v4  ;;  %3051 = vmatmul.msk.bf16.vlgmr.msra.gmra.mxu2 %vm1224_vm0, %v4088_v17  ;;  %v1454_v60 = vpop.f32.mrf.mxu0 }
  0xd0   : > { %1600 = vmatmul.bf16.vlgmr.msra.gmra.mxu3 %v3566_v62  ;;  %v1356_v18 = vpop.f32.mrf.mxu2  ;;  %1649 = vmatmul.bf16.vlgmr.msra.gmra.mxu0 %v3740_v31  ;;  %v2483_v62 = vld [vmem:[%s3482_s13 + $0x64] sm:$0xf0] }
  0xd1   : > { %v1357_v24 = vadd.f32 %v1356_v18, %v1308_v56  ;;  %v4112_v14 = vor.u32 %v3174_v28, %v2483_v62  ;;  %v4114_v56 = vor.u32 %v3178_v46, %v2489_v51  ;;  %v2823_v46 = vld [vmem:[%s4772_s1 + $0x148] sm:$0xf0] }
  0xd2   : > { %v1309_v50 = vpop.f32.mrf.mxu1 }
  0xd3   : > { %v1405_v39 = vpop.f32.mrf.mxu3  ;;  %v1310_v17 = vadd.f32 %v1309_v50, %v1261_v15 }
  0xd4   : > { %v1406_v36 = vadd.f32 %v1405_v39, %v1357_v24 }
  0xd5   : > { %v1456_v20 = vpop.f32.mrf.mxu0 }
  0xd6   : > { %v4105_v38 = vadd.f32 %v1454_v60, %v1406_v36  ;;  %v3261_v36 = vld [vmem:[%s4772_s1 + $0x144] sm:$0xf] }
  0xd7   : > { %v2826_v51 = vor.u32 %v3261_v36, %v2823_v46 }
  0xd8   : > { %v1358_v12 = vpop.f32.mrf.mxu2 }
  0xd9   : > { %v1359_v34 = vadd.f32 %v1358_v12, %v1310_v17  ;;  %1693 = vmatpush.bf16.msrb.mxu1 %v2826_v51 }
  0xda   : > { %v1312_v31 = vpop.f32.mrf.mxu1 }
  0xdb   : > { %v1407_v43 = vpop.f32.mrf.mxu3  ;;  %v1313_v18 = vadd.f32 %v1312_v31, %v1264_v9  ;;  %v3181_v9 = vld [vmem:[%s3482_s13 + $0x84] sm:$0xf] }
  0xdc   : > { %v1408_v15 = vadd.f32 %v1407_v43, %v1359_v34  ;;  %v2517_v34 = vld [vmem:[%s3482_s13 + $0x88] sm:$0xf]  ;;  %v3185_v31 = vld [vmem:[%s3482_s13 + $0xa0] sm:$0xf0] }
  0xdd   : > { %1507 = vmatmul.bf16.gmra.mxu1 %v4112_v14  ;;  %3052 = vmatmul.msk.bf16.gmra.mxu2 %vm1224_vm0, %v4114_v56  ;;  %v1459_v43 = vpop.f32.mrf.mxu0  ;;  %v4140_v51 = vor.u32 %v3185_v31, %v2517_v34 }
  0xde   : > { %v4116_v24 = vadd.f32 %v1456_v20, %v1408_v15  ;;  %v1266_v20 = vadd.f32 %v1265_v0, %v4019_v13  ;;  %v1269_v0 = vadd.f32 %v3987_v52, %v4019_v13  ;;  %v3259_v52 = vld [vmem:[%s4772_s1 + $0x134] sm:$0xf] }
  0xe0   : > { %1605 = vmatmul.bf16.gmra.mxu3 %v3682_v61  ;;  %v1361_v28 = vpop.f32.mrf.mxu2  ;;  %1654 = vmatmul.bf16.gmra.mxu0 %v3766_v53  ;;  %v2511_v61 = vld [vmem:[%s3482_s13 + $0x9c] sm:$0xf0] }
  0xe1   : > { %v1362_v17 = vadd.f32 %v1361_v28, %v1313_v18  ;;  %v4138_v18 = vor.u32 %v3181_v9, %v2511_v61 }
  0xe2   : > { %v1314_v60 = vpop.f32.mrf.mxu1 }
  0xe3   : > { %v1410_v29 = vpop.f32.mrf.mxu3  ;;  %v1315_v39 = vadd.f32 %v1314_v60, %v1266_v20 }
  0xe4   : > { %v1411_v50 = vadd.f32 %v1410_v29, %v1362_v17  ;;  %v2815_v17 = vld [vmem:[%s4772_s1 + $0x138] sm:$0xf0] }
  0xe5   : > { %v1461_v12 = vpop.f32.mrf.mxu0  ;;  %v2818_v60 = vor.u32 %v3259_v52, %v2815_v17  ;;  %v1274_v52 = vadd.f32 %v4049_v5, %v4019_v13  ;;  %v3257_v5 = vld [vmem:[%s4772_s1 + $0x124] sm:$0xf] }
  0xe6   : > { %v4130_v62 = vadd.f32 %v1459_v43, %v1411_v50  ;;  %v1271_v50 = vadd.f32 %v4031_v25, %v4019_v13 }
  0xe7   : > { %1694 = vmatpush.bf16.msrb.mxu1 %v2818_v60 }
  0xe8   : > { %v1363_v15 = vpop.f32.mrf.mxu2 }
  0xe9   : > { %v1364_v36 = vadd.f32 %v1363_v15, %v1315_v39 }
  0xea   : > { %v1317_v53 = vpop.f32.mrf.mxu1 }
  0xeb   : > { %v1412_v46 = vpop.f32.mrf.mxu3  ;;  %v1318_v20 = vadd.f32 %v1317_v53, %v1269_v0  ;;  %v3188_v0 = vld [vmem:[%s3482_s13 + $0xbc] sm:$0xf] }
  0xec   : > { %v1413_v28 = vadd.f32 %v1412_v46, %v1364_v36  ;;  %v2539_v36 = vld [vmem:[%s3482_s13 + $0xd4] sm:$0xf0]  ;;  %v2545_v46 = vld [vmem:[%s3482_s13 + $0xc0] sm:$0xf]  ;;  %v3192_v53 = vld [vmem:[%s3482_s13 + $0xd8] sm:$0xf0] }
  0xed   : > { %1512 = vmatmul.bf16.gmra.mxu1 %v4138_v18  ;;  %3053 = vmatmul.msk.bf16.gmra.mxu2 %vm1224_vm0, %v4140_v51  ;;  %v1464_v29 = vpop.f32.mrf.mxu0  ;;  %v4167_v60 = vor.u32 %v3192_v53, %v2545_v46 }
  0xee   : > { %v4142_v43 = vadd.f32 %v1461_v12, %v1413_v28 }
  0xf0   : > { %1610 = vmatmul.bf16.gmra.mxu3 %v3529_v44  ;;  %v1366_v39 = vpop.f32.mrf.mxu2  ;;  %1659 = vmatmul.bf16.gmra.mxu0 %v3792_v6 }
  0xf1   : > { %v1367_v9 = vadd.f32 %v1366_v39, %v1318_v20  ;;  %v4165_v20 = vor.u32 %v3188_v0, %v2539_v36 }
  0xf2   : > { %v1319_v61 = vpop.f32.mrf.mxu1 }
  0xf3   : > { %v1415_v12 = vpop.f32.mrf.mxu3  ;;  %v1320_v34 = vadd.f32 %v1319_v61, %v1271_v50 }
  0xf4   : > { %v1416_v31 = vadd.f32 %v1415_v12, %v1367_v9  ;;  %v2807_v9 = vld [vmem:[%s4772_s1 + $0x128] sm:$0xf0] }
  0xf5   : > { %v1466_v44 = vpop.f32.mrf.mxu0  ;;  %v2810_v61 = vor.u32 %v3257_v5, %v2807_v9 }
  0xf6   : > { %v4157_v15 = vadd.f32 %v1464_v29, %v1416_v31  ;;  %v1276_v31 = vadd.f32 %v4073_v57, %v4019_v13 }
  0xf7   : > { %1695 = vmatpush.bf16.msrb.mxu1 %v2810_v61 }
  0xf8   : > { %v1368_v28 = vpop.f32.mrf.mxu2 }
  0xf9   : > { %v1369_v17 = vadd.f32 %v1368_v28, %v1320_v34 }
  0xfa   : > { %v1322_v6 = vpop.f32.mrf.mxu1 }
  0xfb   : > { %v1417_v25 = vpop.f32.mrf.mxu3  ;;  %v1323_v39 = vadd.f32 %v1322_v6, %v1274_v52  ;;  %v3195_v52 = vld [vmem:[%s3482_s13 + $0xf4] sm:$0xf] }
  0xfc   : > { %v1418_v50 = vadd.f32 %v1417_v25, %v1369_v17  ;;  %v2567_v17 = vld [vmem:[%s3482_s13 + $0x10c] sm:$0xf0]  ;;  %v2573_v25 = vld [vmem:[%s3482_s13 + $0xf8] sm:$0xf]  ;;  %v3199_v6 = vld [vmem:[%s3482_s13 + $0x110] sm:$0xf0] }
  0xfd   : > { %1517 = vmatmul.bf16.gmra.mxu1 %v4165_v20  ;;  %3054 = vmatmul.msk.bf16.gmra.mxu2 %vm1224_vm0, %v4167_v60  ;;  %v1469_v12 = vpop.f32.mrf.mxu0  ;;  %v4190_v61 = vor.u32 %v3195_v52, %v2567_v17  ;;  %v4192_v13 = vor.u32 %v3199_v6, %v2573_v25  ;;  %v2975_v52 = vld [vmem:[%s4772_s1 + $0x278] sm:$0xf0]  ;;  %v3281_v17 = vld [vmem:[%s4772_s1 + $0x1e4] sm:$0xf]  ;;  %v2903_v25 = vld [vmem:[%s4772_s1 + $0x1e8] sm:$0xf0] }
  0xfe   : > { %v4169_v29 = vadd.f32 %v1466_v44, %v1418_v50 }
 0x100   : > { %1615 = vmatmul.bf16.gmra.mxu3 %v3645_v40  ;;  %v1371_v34 = vpop.f32.mrf.mxu2  ;;  %1664 = vmatmul.bf16.gmra.mxu0 %v3818_v21 }
 0x101   : > { %v1372_v0 = vadd.f32 %v1371_v34, %v1323_v39  ;;  %v2911_v34 = vld [vmem:[%s4772_s1 + $0x1f8] sm:$0xf0] }
 0x102   : > { %v1324_v36 = vpop.f32.mrf.mxu1 }
 0x103   : > { %v1420_v44 = vpop.f32.mrf.mxu3  ;;  %v1325_v46 = vadd.f32 %v1324_v36, %v1276_v31  ;;  %v3299_v36 = vld [vmem:[%s4772_s1 + $0x274] sm:$0xf] }
 0x104   : > { %v1421_v53 = vadd.f32 %v1420_v44, %v1372_v0  ;;  %v2799_v44 = vld [vmem:[%s4772_s1 + $0x118] sm:$0xf0] }
 0x105   : > { %v1471_v40 = vpop.f32.mrf.mxu0 }
 0x106   : > { %v4184_v28 = vadd.f32 %v1469_v12, %v1421_v53  ;;  %v3283_v12 = vld [vmem:[%s4772_s1 + $0x1f4] sm:$0xf] }
 0x107   : > { %v2914_v31 = vor.u32 %v3283_v12, %v2911_v34 }
 0x108   : > { %v1373_v50 = vpop.f32.mrf.mxu2 }
 0x109   : > { %v1374_v5 = vadd.f32 %v1373_v50, %v1325_v46  ;;  %1739 = vmatpush.bf16.msrb.mxu2 %v2914_v31  ;;  %v2895_v31 = vld [vmem:[%s4772_s1 + $0x1d8] sm:$0xf0] }
 0x10a   : > { %v1327_v57 = vpop.f32.mrf.mxu1 }
 0x10b   : > { %v1422_v9 = vpop.f32.mrf.mxu3  ;;  %v1328_v21 = vadd.f32 %v1327_v57, %v4022_v16  ;;  %v3255_v16 = vld [vmem:[%s4772_s1 + $0x114] sm:$0xf]  ;;  %v2967_v57 = vld [vmem:[%s4772_s1 + $0x268] sm:$0xf0] }
 0x10c   : > { %v1423_v39 = vadd.f32 %v1422_v9, %v1374_v5  ;;  %v2802_v53 = vor.u32 %v3255_v16, %v2799_v44  ;;  %v3297_v9 = vld [vmem:[%s4772_s1 + $0x264] sm:$0xf]  ;;  %v3202_v16 = vld [vmem:[%s3482_s13 + $0x12c] sm:$0xf]  ;;  %v2595_v44 = vld [vmem:[%s3482_s13 + $0x144] sm:$0xf0] }
 0x10d   : > { %1522 = vmatmul.bf16.gmra.mxu1 %v4190_v61  ;;  %3055 = vmatmul.msk.bf16.gmra.mxu2 %vm1224_vm0, %v4192_v13  ;;  %v1474_v46 = vpop.f32.mrf.mxu0  ;;  %v2970_v12 = vor.u32 %v3297_v9, %v2967_v57  ;;  %v2887_v9 = vld [vmem:[%s4772_s1 + $0x1c8] sm:$0xf0] }
 0x10e   : > { %v4201_v0 = vadd.f32 %v1471_v40, %v1423_v39  ;;  %v2978_v40 = vor.u32 %v3299_v36, %v2975_v52  ;;  %1696 = vmatpush.bf16.msrb.mxu1 %v2802_v53  ;;  %v3295_v52 = vld [vmem:[%s4772_s1 + $0x254] sm:$0xf] }
 0x110   : > { %1620 = vmatmul.bf16.gmra.mxu3 %v3531_v45  ;;  %v1376_v6 = vpop.f32.mrf.mxu2  ;;  %v2906_v45 = vor.u32 %v3281_v17, %v2903_v25  ;;  %1669 = vmatmul.bf16.gmra.mxu0 %v3844_v42  ;;  %v3279_v42 = vld [vmem:[%s4772_s1 + $0x1d4] sm:$0xf]  ;;  %v2601_v25 = vld [vmem:[%s3482_s13 + $0x130] sm:$0xf] }
 0x111   : > { %v1377_v50 = vadd.f32 %v1376_v6, %v1328_v21  ;;  %1788 = vmatpush.bf16.msrb.mxu3 %v2978_v40  ;;  %v2898_v36 = vor.u32 %v3279_v42, %v2895_v31  ;;  %v3315_v40 = vld [vmem:[%s4772_s1 + $0x2f4] sm:$0xf]  ;;  %v3206_v6 = vld [vmem:[%s3482_s13 + $0x148] sm:$0xf0]  ;;  %v4263_v42 = vor.u32 %v3202_v16, %v2595_v44 }
 0x112   : > { %v1329_v39 = vpop.f32.mrf.mxu1  ;;  %1740 = vmatpush.bf16.msrb.mxu2 %v2906_v45  ;;  %v4265_v31 = vor.u32 %v3206_v6, %v2601_v25  ;;  %v3031_v16 = vld [vmem:[%s4772_s1 + $0x2e8] sm:$0xf0] }
 0x113   : > { %v1425_v5 = vpop.f32.mrf.mxu3  ;;  %v1330_v34 = vadd.f32 %v1329_v39, %v4043_v63  ;;  %v2959_v63 = vld [vmem:[%s4772_s1 + $0x258] sm:$0xf0] }
 0x114   : > { %v1426_v21 = vadd.f32 %v1425_v5, %v1377_v50  ;;  %v2962_v45 = vor.u32 %v3295_v52, %v2959_v63  ;;  %v3277_v5 = vld [vmem:[%s4772_s1 + $0x1c4] sm:$0xf]  ;;  %4806 = vst [vmem:[#allocation15_spill] sm:$0xff] %v4265_v31  ;;  %v2951_v52 = vld [vmem:[%s4772_s1 + $0x248] sm:$0xf0] }
 0x115   : > { %1789 = vmatpush.bf16.msrb.mxu3 %v2970_v12  ;;  %v1476_v17 = vpop.f32.mrf.mxu0  ;;  %v2890_v39 = vor.u32 %v3277_v5, %v2887_v9  ;;  %v3313_v63 = vld [vmem:[%s4772_s1 + $0x2e4] sm:$0xf]  ;;  %v2791_v5 = vld [vmem:[%s4772_s1 + $0x108] sm:$0xf0] }
 0x116   : > { %v4241_v53 = vadd.f32 %v1474_v46, %v1426_v21  ;;  %1741 = vmatpush.bf16.msrb.mxu2 %v2898_v36  ;;  %v3039_v46 = vld [vmem:[%s4772_s1 + $0x2f8] sm:$0xf0]  ;;  %v3293_v36 = vld [vmem:[%s4772_s1 + $0x244] sm:$0xf]  ;;  %v3034_v6 = vor.u32 %v3313_v63, %v3031_v16 }
 0x117   : > { %v3042_v50 = vor.u32 %v3315_v40, %v3039_v46  ;;  %v2954_v25 = vor.u32 %v3293_v36, %v2951_v52  ;;  %v2879_v46 = vld [vmem:[%s4772_s1 + $0x1b8] sm:$0xf0] }
 0x118   : > { %v1378_v57 = vpop.f32.mrf.mxu2  ;;  %v3023_v36 = vld [vmem:[%s4772_s1 + $0x2d8] sm:$0xf0] }
 0x119   : > { %v1379_v12 = vadd.f32 %v1378_v57, %v1330_v34  ;;  %1790 = vmatpush.bf16.msrb.mxu3 %v2962_v45  ;;  %1837 = vmatpush.bf16.msrb.mxu0 %v3042_v50  ;;  %v3275_v45 = vld [vmem:[%s4772_s1 + $0x1b4] sm:$0xf] }
 0x11a   : > { %v1332_v34 = vpop.f32.mrf.mxu1  ;;  %1742 = vmatpush.bf16.msrb.mxu2 %v2890_v39  ;;  %v2882_v9 = vor.u32 %v3275_v45, %v2879_v46  ;;  %v3291_v57 = vld [vmem:[%s4772_s1 + $0x234] sm:$0xf]  ;;  %v2935_v46 = vld [vmem:[%s4772_s1 + $0x228] sm:$0xf0] }
 0x11b   : > { %v1427_v21 = vpop.f32.mrf.mxu3  ;;  %v1333_v44 = vadd.f32 %v1332_v34, %v4070_v48  ;;  %v3253_v48 = vld [vmem:[%s4772_s1 + $0x104] sm:$0xf]  ;;  %v2871_v34 = vld [vmem:[%s4772_s1 + $0x1a8] sm:$0xf0] }
 0x11c   : > { %v1428_v40 = vadd.f32 %v1427_v21, %v1379_v12  ;;  %v2794_v39 = vor.u32 %v3253_v48, %v2791_v5  ;;  %v2943_v12 = vld [vmem:[%s4772_s1 + $0x238] sm:$0xf0]  ;;  %v3311_v21 = vld [vmem:[%s4772_s1 + $0x2d4] sm:$0xf]  ;;  %v3309_v48 = vld [vmem:[%s4772_s1 + $0x2c4] sm:$0xf] }
 0x11d   : > { %1527 = vmatmul.bf16.gmra.mxu1 %v4263_v42  ;;  %3056 = vmatmul.msk.bf16.gmra.mxu2 %vm1224_vm0, %v4265_v31  ;;  %v2946_v52 = vor.u32 %v3291_v57, %v2943_v12  ;;  %v3026_v63 = vor.u32 %v3311_v21, %v3023_v36  ;;  %v3271_v12 = vld [vmem:[%s4772_s1 + $0x194] sm:$0xf]  ;;  %v2863_v21 = vld [vmem:[%s4772_s1 + $0x198] sm:$0xf0]  ;;  %v3209_v36 = vld [vmem:[%s3482_s13 + $0x164] sm:$0xf] }
 0x11e   : > { %v4286_v50 = vadd.f32 %v1476_v17, %v1428_v40  ;;  %v1479_v17 = vpop.f32.mrf.mxu0  ;;  %1838 = vmatpush.bf16.msrb.mxu0 %v3034_v6  ;;  %1791 = vmatpush.bf16.msrb.mxu3 %v2954_v25  ;;  %v3289_v25 = vld [vmem:[%s4772_s1 + $0x224] sm:$0xf] }
 0x11f   : > { %1743 = vmatpush.bf16.msrb.mxu2 %v2882_v9  ;;  %1697 = vmatpush.bf16.msrb.mxu1 %v2794_v39 }
 0x120   : > { %1625 = vmatmul.bf16.gmra.mxu3 %v3647_v41  ;;  %v3273_v41 = vld [vmem:[%s4772_s1 + $0x1a4] sm:$0xf]  ;;  %v1381_v16 = vpop.f32.mrf.mxu2  ;;  %1674 = vmatmul.bf16.gmra.mxu0 %v3894_v19  ;;  %v3015_v19 = vld [vmem:[%s4772_s1 + $0x2c8] sm:$0xf0] }
 0x121   : > { %v2874_v40 = vor.u32 %v3273_v41, %v2871_v34  ;;  %v1382_v6 = vadd.f32 %v1381_v16, %v1333_v44  ;;  %v2938_v44 = vor.u32 %v3289_v25, %v2935_v46  ;;  %v3018_v39 = vor.u32 %v3309_v48, %v3015_v19  ;;  %v3307_v16 = vld [vmem:[%s4772_s1 + $0x2b4] sm:$0xf]  ;;  %v3269_v48 = vld [vmem:[%s4772_s1 + $0x184] sm:$0xf] }
 0x122   : > { %v1334_v5 = vpop.f32.mrf.mxu1  ;;  %1839 = vmatpush.bf16.msrb.mxu0 %v3026_v63  ;;  %1792 = vmatpush.bf16.msrb.mxu3 %v2946_v52  ;;  %v2623_v63 = vld [vmem:[%s3482_s13 + $0x17c] sm:$0xf0]  ;;  %v2866_v41 = vor.u32 %v3271_v12, %v2863_v21  ;;  %v2927_v52 = vld [vmem:[%s4772_s1 + $0x218] sm:$0xf0] }
 0x123   : > { %v1430_v45 = vpop.f32.mrf.mxu3  ;;  %v1335_v9 = vadd.f32 %v1334_v5, %v4084_v30  ;;  %1744 = vmatpush.bf16.msrb.mxu2 %v2874_v40  ;;  %v3287_v30 = vld [vmem:[%s4772_s1 + $0x214] sm:$0xf]  ;;  %v2855_v5 = vld [vmem:[%s4772_s1 + $0x188] sm:$0xf0]  ;;  %v4360_v21 = vor.u32 %v3209_v36, %v2623_v63 }
 0x124   : > { %v1431_v57 = vadd.f32 %v1430_v45, %v1382_v6  ;;  %v2629_v6 = vld [vmem:[%s3482_s13 + $0x168] sm:$0xf]  ;;  %v3213_v45 = vld [vmem:[%s3482_s13 + $0x180] sm:$0xf0]  ;;  %v2930_v25 = vor.u32 %v3287_v30, %v2927_v52  ;;  %v2999_v36 = vld [vmem:[%s4772_s1 + $0x2a8] sm:$0xf0] }
 0x125   : > { %v4362_v31 = vor.u32 %v3213_v45, %v2629_v6  ;;  %v3305_v30 = vld [vmem:[%s4772_s1 + $0x2a4] sm:$0xf] }
 0x126   : > { %v4338_v34 = vadd.f32 %v1479_v17, %v1431_v57  ;;  %v1481_v40 = vpop.f32.mrf.mxu0  ;;  %1840 = vmatpush.bf16.msrb.mxu0 %v3018_v39  ;;  %v3007_v17 = vld [vmem:[%s4772_s1 + $0x2b8] sm:$0xf0]  ;;  %1793 = vmatpush.bf16.msrb.mxu3 %v2938_v44  ;;  %v2858_v57 = vor.u32 %v3269_v48, %v2855_v5  ;;  %v3285_v44 = vld [vmem:[%s4772_s1 + $0x204] sm:$0xf]  ;;  %v3002_v6 = vor.u32 %v3305_v30, %v2999_v36 }
 0x127   : > { %1745 = vmatpush.bf16.msrb.mxu2 %v2866_v41  ;;  %v3010_v46 = vor.u32 %v3307_v16, %v3007_v17  ;;  %v2919_v41 = vld [vmem:[%s4772_s1 + $0x208] sm:$0xf0]  ;;  %v3317_v17 = vld [vmem:[%s4772_s1 + $0x304] sm:$0xf]  ;;  %v2991_v48 = vld [vmem:[%s4772_s1 + $0x298] sm:$0xf0] }
 0x128   : > { %v1383_v19 = vpop.f32.mrf.mxu2  ;;  %v3216_v36 = vld [vmem:[%s3482_s13 + $0x19c] sm:$0xf] }
 0x129   : > { %v1384_v12 = vadd.f32 %v1383_v19, %v1335_v9  ;;  %v2922_v9 = vor.u32 %v3285_v44, %v2919_v41 }
 0x12a   : > { %v1337_v52 = vpop.f32.mrf.mxu1  ;;  %1841 = vmatpush.bf16.msrb.mxu0 %v3010_v46  ;;  %1794 = vmatpush.bf16.msrb.mxu3 %v2930_v25  ;;  %v3047_v46 = vld [vmem:[%s4772_s1 + $0x308] sm:$0xf0] }
 0x12b   : > { %v1432_v39 = vpop.f32.mrf.mxu3  ;;  %v1338_v63 = vadd.f32 %v1337_v52, %v4034_v27  ;;  %1746 = vmatpush.bf16.msrb.mxu2 %v2858_v57  ;;  %v3303_v27 = vld [vmem:[%s4772_s1 + $0x294] sm:$0xf]  ;;  %v3050_v25 = vor.u32 %v3317_v17, %v3047_v46 }
 0x12c   : > { %v1433_v16 = vadd.f32 %v1432_v39, %v1384_v12  ;;  %v2994_v5 = vor.u32 %v3303_v27, %v2991_v48  ;;  %v2983_v39 = vld [vmem:[%s4772_s1 + $0x288] sm:$0xf0] }
 0x12d   : > { %1532 = vmatmul.bf16.gmra.mxu1 %v4360_v21  ;;  %3057 = vmatmul.msk.bf16.gmra.mxu2 %vm1224_vm0, %v4362_v31 }
 0x12e   : > { %v4377_v45 = vadd.f32 %v1481_v40, %v1433_v16  ;;  %v1484_v40 = vpop.f32.mrf.mxu0  ;;  %1842 = vmatpush.bf16.msrb.mxu0 %v3002_v6  ;;  %1795 = vmatpush.bf16.msrb.mxu3 %v2922_v9  ;;  %v2651_v16 = vld [vmem:[%s3482_s13 + $0x1b4] sm:$0xf0]  ;;  %v3220_v6 = vld [vmem:[%s3482_s13 + $0x1b8] sm:$0xf0] }
 0x12f   : > { %1893 = vmatpush.bf16.msra.mxu1 %v3050_v25  ;;  %v4409_v25 = vor.u32 %v3216_v36, %v2651_v16 }
 0x130   : > { %1630 = vmatmul.bf16.gmra.mxu3 %v3542_v49  ;;  %v1386_v19 = vpop.f32.mrf.mxu2  ;;  %1679 = vmatmul.bf16.gmra.mxu0 %v3974_v35  ;;  %v3301_v49 = vld [vmem:[%s4772_s1 + $0x284] sm:$0xf]  ;;  %v2657_v35 = vld [vmem:[%s3482_s13 + $0x1a0] sm:$0xf] }
 0x131   : > { %v1387_v57 = vadd.f32 %v1386_v19, %v1338_v63  ;;  %v2986_v41 = vor.u32 %v3301_v49, %v2983_v39  ;;  %v4411_v48 = vor.u32 %v3220_v6, %v2657_v35 }
 0x132   : > { %v1339_v44 = vpop.f32.mrf.mxu1  ;;  %1843 = vmatpush.bf16.msrb.mxu0 %v2994_v5 }
 0x133   : > { %v1435_v12 = vpop.f32.mrf.mxu3  ;;  %v1340_v30 = vadd.f32 %v1339_v44, %v4052_v10 }
 0x134   : > { %v1436_v52 = vadd.f32 %v1435_v12, %v1387_v57 }
 0x136   : > { %v4403_v9 = vadd.f32 %v1484_v40, %v1436_v52  ;;  %v1486_v63 = vpop.f32.mrf.mxu0  ;;  %1844 = vmatpush.bf16.msrb.mxu0 %v2986_v41 }
 0x138   : > { %v1388_v17 = vpop.f32.mrf.mxu2 }
 0x139   : > { %v1389_v46 = vadd.f32 %v1388_v17, %v1340_v30 }
 0x13a   : > { %v1342_v5 = vpop.f32.mrf.mxu1 }
 0x13b   : > { %v1437_v27 = vpop.f32.mrf.mxu3  ;;  %v1343_v19 = vadd.f32 %v1342_v5, %v4076_v59 }
 0x13c   : > { %v1438_v10 = vadd.f32 %v1437_v27, %v1389_v46 }
 0x13d   : > { %1537 = vmatmul.bf16.gmra.mxu1 %v4409_v25  ;;  %3058 = vmatmul.msk.bf16.gmra.mxu2 %vm1224_vm0, %v4411_v48 }
 0x13e   : > { %v4414_v57 = vadd.f32 %v1486_v63, %v1438_v10  ;;  %v1489_v40 = vpop.f32.mrf.mxu0 }
 0x140   : > { %1635 = vmatmul.bf16.gmra.mxu3 %v3658_v47  ;;  %v1391_v12 = vpop.f32.mrf.mxu2  ;;  %1684 = vmatmul.bf16.gmra.mxu0 %v4045_v3 }
 0x141   : > { %v1392_v49 = vadd.f32 %v1391_v12, %v1343_v19 }
 0x142   : > { %v1344_v44 = vpop.f32.mrf.mxu1 }
 0x143   : > { %v1440_v39 = vpop.f32.mrf.mxu3  ;;  %v1345_v41 = vadd.f32 %v1344_v44, %v4091_v2  ;;  %v4431_v2 = vperm.slane %v3999_v1, 1 }
 0x144   : > { %v1441_v59 = vadd.f32 %v1440_v39, %v1392_v49 }
 0x146   : > { %v4422_v30 = vadd.f32 %v1489_v40, %v1441_v59  ;;  %v1491_v52 = vpop.f32.mrf.mxu0 }
 0x148   : > { %v1393_v36 = vpop.f32.mrf.mxu2 }
 0x149   : > { %v1394_v63 = vadd.f32 %v1393_v36, %v1345_v41 }
 0x14a   : > { %v1503_v35 = vpop.f32.mrf.mxu1 }
 0x14b   : > { %v1442_v16 = vpop.f32.mrf.mxu3  ;;  %v1504_v47 = vadd.f32 %v1503_v35, %v4105_v38 }
 0x14c   : > { %v1443_v6 = vadd.f32 %v1442_v16, %v1394_v63 }
 0x14d   : > { %1698 = vmatmul.bf16.vlgmr.msrb.gmra.mxu1 %v3742_v32  ;;  %1747 = vmatmul.bf16.vlgmr.msrb.gmra.mxu2 %v3744_v33 }
 0x14e   : > { %v4425_v17 = vadd.f32 %v1491_v52, %v1443_v6  ;;  %v1650_v3 = vpop.f32.mrf.mxu0 }
 0x150   : > { %1796 = vmatmul.bf16.vlgmr.msrb.gmra.mxu3 %v3750_v37  ;;  %v1552_v46 = vpop.f32.mrf.mxu2  ;;  %1845 = vmatmul.bf16.vlgmr.msrb.gmra.mxu0 %v4086_v4 }
 0x151   : > { %v1553_v27 = vadd.f32 %v1552_v46, %v1504_v47 }
 0x152   : > { %v1505_v19 = vpop.f32.mrf.mxu1 }
 0x153   : > { %v1601_v5 = vpop.f32.mrf.mxu3  ;;  %v1506_v10 = vadd.f32 %v1505_v19, %v4116_v24  ;;  %v1935_v39 = vmax.f32 %v1553_v27, 0.0 }
 0x154   : > { %v1602_v38 = vadd.f32 %v1601_v5, %v4431_v2 }
 0x156   : > { %v4436_v40 = vadd.f32 %v1650_v3, %v1602_v38  ;;  %v1652_v32 = vpop.f32.mrf.mxu0 }
 0x158   : > { %v1554_v33 = vpop.f32.mrf.mxu2 }
 0x159   : > { %v1555_v12 = vadd.f32 %v1554_v33, %v1506_v10 }
 0x15a   : > { %v1508_v49 = vpop.f32.mrf.mxu1 }
 0x15b   : > { %v1603_v37 = vpop.f32.mrf.mxu3  ;;  %v1937_v44 = vmax.f32 %v1555_v12, 0.0  ;;  %v1509_v41 = vadd.f32 %v1508_v49, %v4130_v62 }
 0x15c   : > { %v1604_v1 = vadd.f32 %v1603_v37, %v4431_v2 }
 0x15d   : > { %v4442_v4 = vpack.c.bf16 %v1937_v44, %v1935_v39  ;;  %1703 = vmatmul.bf16.gmra.mxu1 %v3768_v54  ;;  %1752 = vmatmul.bf16.gmra.mxu2 %v3770_v55 }
 0x15e   : > { %v4440_v59 = vadd.f32 %v1652_v32, %v1604_v1  ;;  %v1655_v24 = vpop.f32.mrf.mxu0 }
 0x160   : > { %1801 = vmatmul.bf16.gmra.mxu3 %v3776_v58  ;;  %v1557_v52 = vpop.f32.mrf.mxu2  ;;  %1850 = vmatmul.bf16.gmra.mxu0 %v4112_v14 }
 0x161   : > { %v1558_v36 = vadd.f32 %v1557_v52, %v1509_v41 }
 0x162   : > { %v1510_v16 = vpop.f32.mrf.mxu1 }
 0x163   : > { %v1606_v63 = vpop.f32.mrf.mxu3  ;;  %v1511_v62 = vadd.f32 %v1510_v16, %v4142_v43  ;;  %v1939_v27 = vmax.f32 %v1558_v36, 0.0 }
 0x164   : > { %v1607_v35 = vadd.f32 %v1606_v63, %v4431_v2 }
 0x166   : > { %v4450_v6 = vadd.f32 %v1655_v24, %v1607_v35  ;;  %v1657_v47 = vpop.f32.mrf.mxu0 }
 0x168   : > { %v1559_v3 = vpop.f32.mrf.mxu2 }
 0x169   : > { %v1560_v54 = vadd.f32 %v1559_v3, %v1511_v62 }
 0x16a   : > { %v1513_v55 = vpop.f32.mrf.mxu1 }
 0x16b   : > { %v1608_v46 = vpop.f32.mrf.mxu3  ;;  %v1941_v5 = vmax.f32 %v1560_v54, 0.0  ;;  %v1514_v19 = vadd.f32 %v1513_v55, %v4157_v15 }
 0x16c   : > { %v1609_v58 = vadd.f32 %v1608_v46, %v4431_v2 }
 0x16d   : > { %1708 = vmatmul.bf16.gmra.mxu1 %v3794_v7  ;;  %1757 = vmatmul.bf16.gmra.mxu2 %v3796_v8  ;;  %v4458_v14 = vpack.c.bf16 %v1941_v5, %v1939_v27 }
 0x16e   : > { %v4454_v38 = vadd.f32 %v1657_v47, %v1609_v58  ;;  %v1660_v43 = vpop.f32.mrf.mxu0 }
 0x170   : > { %1806 = vmatmul.bf16.gmra.mxu3 %v3802_v11  ;;  %v1562_v10 = vpop.f32.mrf.mxu2  ;;  %1855 = vmatmul.bf16.gmra.mxu0 %v4138_v18 }
 0x171   : > { %v1563_v32 = vadd.f32 %v1562_v10, %v1514_v19 }
 0x172   : > { %v1515_v12 = vpop.f32.mrf.mxu1 }
 0x173   : > { %v1611_v33 = vpop.f32.mrf.mxu3  ;;  %v1516_v15 = vadd.f32 %v1515_v12, %v4169_v29  ;;  %v1943_v41 = vmax.f32 %v1563_v32, 0.0  ;;  %v4809_v32 = vld [vmem:[#allocation4_spill] sm:$0xff] }
 0x174   : > { %v1612_v37 = vadd.f32 %v1611_v33, %v4431_v2 }
 0x176   : > { %v4464_v49 = vadd.f32 %v1660_v43, %v1612_v37  ;;  %v1662_v7 = vpop.f32.mrf.mxu0  ;;  %v4808_v43 = vld [vmem:[#allocation3_spill] sm:$0xff] }
 0x178   : > { %v1564_v1 = vpop.f32.mrf.mxu2 }
 0x179   : > { %v1565_v8 = vadd.f32 %v1564_v1, %v1516_v15 }
 0x17a   : > { %v1518_v44 = vpop.f32.mrf.mxu1 }
 0x17b   : > { %v1613_v39 = vpop.f32.mrf.mxu3  ;;  %v1945_v24 = vmax.f32 %v1565_v8, 0.0  ;;  %v1519_v52 = vadd.f32 %v1518_v44, %v4184_v28  ;;  %v3324_v44 = vld [vmem:[%s4774_s3 + $0x28] sm:$0xff] }
 0x17c   : > { %v1614_v11 = vadd.f32 %v1613_v39, %v4431_v2 }
 0x17d   : > { %1713 = vmatmul.bf16.gmra.mxu1 %v3820_v22  ;;  %1762 = vmatmul.bf16.gmra.mxu2 %v3822_v23  ;;  %v4472_v18 = vpack.c.bf16 %v1945_v24, %v1943_v41 }
 0x17e   : > { %v4468_v36 = vadd.f32 %v1662_v7, %v1614_v11  ;;  %v1665_v29 = vpop.f32.mrf.mxu0 }
 0x180   : > { %1811 = vmatmul.bf16.gmra.mxu3 %v3828_v26  ;;  %v1567_v63 = vpop.f32.mrf.mxu2  ;;  %1860 = vmatmul.bf16.gmra.mxu0 %v4165_v20  ;;  %v3326_v20 = vld [vmem:[%s4774_s3 + $0x38] sm:$0xff] }
 0x181   : > { %v1568_v16 = vadd.f32 %v1567_v63, %v1519_v52  ;;  %2115 = vmatpush.bf16.msra.mxu2 %v3326_v20  ;;  %v3320_v20 = vld [vmem:[%s4774_s3 + $0x8] sm:$0xff] }
 0x182   : > { %v1520_v62 = vpop.f32.mrf.mxu1 }
 0x183   : > { %v1616_v35 = vpop.f32.mrf.mxu3  ;;  %v1521_v28 = vadd.f32 %v1520_v62, %v4201_v0  ;;  %v1947_v58 = vmax.f32 %v1568_v16, 0.0  ;;  %v4807_v0 = vld [vmem:[#allocation2_spill] sm:$0xff]  ;;  %v4810_v62 = vld [vmem:[#allocation5_spill] sm:$0xff] }
 0x184   : > { %v1617_v47 = vadd.f32 %v1616_v35, %v4431_v2  ;;  %v3322_v35 = vld [vmem:[%s4774_s3 + $0x18] sm:$0xff] }
 0x186   : > { %v4478_v3 = vadd.f32 %v1665_v29, %v1617_v47  ;;  %v1667_v22 = vpop.f32.mrf.mxu0  ;;  %v4811_v47 = vld [vmem:[#allocation6_spill] sm:$0xff] }
 0x188   : > { %v1569_v54 = vpop.f32.mrf.mxu2 }
 0x189   : > { %v1570_v23 = vadd.f32 %v1569_v54, %v1521_v28 }
 0x18a   : > { %v1523_v55 = vpop.f32.mrf.mxu1 }
 0x18b   : > { %v1618_v46 = vpop.f32.mrf.mxu3  ;;  %v1949_v27 = vmax.f32 %v1570_v23, 0.0  ;;  %v1524_v5 = vadd.f32 %v1523_v55, %v4241_v53  ;;  %v3325_v53 = vld [vmem:[%s4774_s3 + $0x30] sm:$0xff] }
 0x18c   : > { %v1619_v26 = vadd.f32 %v1618_v46, %v4431_v2  ;;  %2116 = vmatpush.bf16.msra.mxu2 %v3325_v53  ;;  %v3321_v46 = vld [vmem:[%s4774_s3 + $0x10] sm:$0xff] }
 0x18d   : > { %1718 = vmatmul.bf16.gmra.mxu1 %v4807_v0  ;;  %1767 = vmatmul.bf16.gmra.mxu2 %v4808_v43  ;;  %v4489_v10 = vpack.c.bf16 %v1949_v27, %v1947_v58 }
 0x18e   : > { %v4482_v19 = vadd.f32 %v1667_v22, %v1619_v26  ;;  %v1670_v33 = vpop.f32.mrf.mxu0  ;;  %v4812_v22 = vld [vmem:[#allocation7_spill] sm:$0xff] }
 0x190   : > { %1816 = vmatmul.bf16.gmra.mxu3 %v4809_v32  ;;  %v1572_v12 = vpop.f32.mrf.mxu2  ;;  %1865 = vmatmul.bf16.gmra.mxu0 %v4190_v61  ;;  %v3323_v61 = vld [vmem:[%s4774_s3 + $0x20] sm:$0xff] }
 0x191   : > { %v1573_v37 = vadd.f32 %v1572_v12, %v1524_v5  ;;  %2117 = vmatpush.bf16.msra.mxu2 %v3324_v44 }
 0x192   : > { %v1525_v7 = vpop.f32.mrf.mxu1 }
 0x193   : > { %v1621_v15 = vpop.f32.mrf.mxu3  ;;  %v1526_v8 = vadd.f32 %v1525_v7, %v4286_v50  ;;  %v1951_v50 = vmax.f32 %v1573_v37, 0.0  ;;  %v4814_v7 = vld [vmem:[#allocation9_spill] sm:$0xff] }
 0x194   : > { %v1622_v1 = vadd.f32 %v1621_v15, %v4431_v2  ;;  %v4813_v15 = vld [vmem:[#allocation8_spill] sm:$0xff] }
 0x195   : > { %2118 = vmatpush.bf16.msra.mxu2 %v3323_v61 }
 0x196   : > { %v4498_v39 = vadd.f32 %v1670_v33, %v1622_v1  ;;  %v4503_v11 = vpop.f32.mrf.mxu0 }
 0x198   : > { %v1574_v41 = vpop.f32.mrf.mxu2 }
 0x199   : > { %v1575_v24 = vadd.f32 %v1574_v41, %v1526_v8  ;;  %2119 = vmatpush.bf16.msra.mxu2 %v3322_v35  ;;  %v4815_v8 = vld [vmem:[#allocation10_spill] sm:$0xff] }
 0x19a   : > { %v1528_v29 = vpop.f32.mrf.mxu1 }
 0x19b   : > { %v4508_v52 = vpop.f32.mrf.mxu3  ;;  %v1953_v63 = vmax.f32 %v1575_v24, 0.0  ;;  %v1529_v16 = vadd.f32 %v1528_v29, %v4338_v34 }
 0x19d   : > { %1723 = vmatmul.bf16.gmra.mxu1 %v4810_v62  ;;  %1772 = vmatmul.bf16.gmra.mxu2 %v4811_v47  ;;  %v4516_v28 = vpack.c.bf16 %v1953_v63, %v1951_v50 }
 0x19e   : > { %v1675_v54 = vpop.f32.mrf.mxu0  ;;  %2120 = vmatpush.bf16.msra.mxu2 %v3321_v46 }
 0x1a0   : > { %1821 = vmatmul.bf16.gmra.mxu3 %v4812_v22  ;;  %v1577_v23 = vpop.f32.mrf.mxu2  ;;  %1870 = vmatmul.bf16.gmra.mxu0 %v4263_v42  ;;  %v3319_v42 = vld [vmem:[%s4774_s3] sm:$0xff]  ;;  %v3334_v22 = vld [vmem:[%s4774_s3 + $0x78] sm:$0xff] }
 0x1a1   : > { %v1578_v34 = vadd.f32 %v1577_v23, %v1529_v16  ;;  %2164 = vmatpush.bf16.msra.mxu3 %v3334_v22 }
 0x1a2   : > { %v1530_v26 = vpop.f32.mrf.mxu1  ;;  %2121 = vmatpush.bf16.msra.mxu2 %v3320_v20 }
 0x1a3   : > { %v1626_v55 = vpop.f32.mrf.mxu3  ;;  %v1531_v27 = vadd.f32 %v1530_v26, %v4377_v45  ;;  %v1955_v45 = vmax.f32 %v1578_v34, 0.0  ;;  %v4816_v34 = vld [vmem:[#allocation11_spill] sm:$0xff]  ;;  %v4818_v26 = vld [vmem:[#allocation13_spill] sm:$0xff] }
 0x1a4   : > { %v1627_v58 = vadd.f32 %v1626_v55, %v4431_v2 }
 0x1a6   : > { %v4525_v5 = vadd.f32 %v1675_v54, %v1627_v58  ;;  %v4530_v0 = vpop.f32.mrf.mxu0  ;;  %2122 = vmatpush.bf16.msra.mxu2 %v3319_v42 }
 0x1a8   : > { %v1579_v43 = vpop.f32.mrf.mxu2 }
 0x1a9   : > { %v1580_v32 = vadd.f32 %v1579_v43, %v1531_v27 }
 0x1aa   : > { %v1533_v12 = vpop.f32.mrf.mxu1 }
 0x1ab   : > { %v4535_v33 = vpop.f32.mrf.mxu3  ;;  %v1957_v53 = vmax.f32 %v1580_v32, 0.0  ;;  %v1534_v37 = vadd.f32 %v1533_v12, %v4403_v9 }
 0x1ad   : > { %1728 = vmatmul.bf16.gmra.mxu1 %v4813_v15  ;;  %1777 = vmatmul.bf16.gmra.mxu2 %v4814_v7  ;;  %v4540_v1 = vpack.c.bf16 %v1957_v53, %v1955_v45 }
 0x1ae   : > { %v1680_v44 = vpop.f32.mrf.mxu0 }
 0x1b0   : > { %1826 = vmatmul.bf16.gmra.mxu3 %v4815_v8  ;;  %v1582_v41 = vpop.f32.mrf.mxu2  ;;  %1875 = vmatmul.bf16.gmra.mxu0 %v4360_v21 }
 0x1b1   : > { %v1583_v61 = vadd.f32 %v1582_v41, %v1534_v37  ;;  %v3333_v37 = vld [vmem:[%s4774_s3 + $0x70] sm:$0xff] }
 0x1b2   : > { %v1535_v29 = vpop.f32.mrf.mxu1  ;;  %2165 = vmatpush.bf16.msra.mxu3 %v3333_v37 }
 0x1b3   : > { %v1631_v24 = vpop.f32.mrf.mxu3  ;;  %v1536_v63 = vadd.f32 %v1535_v29, %v4414_v57  ;;  %v1959_v23 = vmax.f32 %v1583_v61, 0.0  ;;  %v4817_v57 = vld [vmem:[#allocation12_spill] sm:$0xff] }
 0x1b4   : > { %v1632_v50 = vadd.f32 %v1631_v24, %v4431_v2 }
 0x1b6   : > { %v4546_v9 = vadd.f32 %v1680_v44, %v1632_v50  ;;  %v4550_v47 = vpop.f32.mrf.mxu0 }
 0x1b8   : > { %v1584_v16 = vpop.f32.mrf.mxu2 }
 0x1b9   : > { %v1585_v35 = vadd.f32 %v1584_v16, %v1536_v63 }
 0x1ba   : > { %v1538_v54 = vpop.f32.mrf.mxu1 }
 0x1bb   : > { %v4548_v62 = vpop.f32.mrf.mxu3  ;;  %v1961_v21 = vmax.f32 %v1585_v35, 0.0  ;;  %v1539_v46 = vadd.f32 %v1538_v54, %v4422_v30 }
 0x1bd   : > { %1733 = vmatmul.bf16.gmra.mxu1 %v4816_v34  ;;  %1782 = vmatmul.bf16.gmra.mxu2 %v4817_v57  ;;  %v4558_v55 = vpack.c.bf16 %v1961_v21, %v1959_v23  ;;  %v3331_v23 = vld [vmem:[%s4774_s3 + $0x60] sm:$0xff]  ;;  %v3330_v57 = vld [vmem:[%s4774_s3 + $0x58] sm:$0xff] }
 0x1be   : > { %v1685_v30 = vpop.f32.mrf.mxu0 }
 0x1c0   : > { %1831 = vmatmul.bf16.gmra.mxu3 %v4818_v26  ;;  %v1587_v58 = vpop.f32.mrf.mxu2  ;;  %1880 = vmatmul.bf16.gmra.mxu0 %v4409_v25  ;;  %v4819_v25 = vld [vmem:[#allocation14_spill] sm:$0xff] }
 0x1c1   : > { %v1588_v27 = vadd.f32 %v1587_v58, %v1539_v46 }
 0x1c2   : > { %v1540_v43 = vpop.f32.mrf.mxu1 }
 0x1c3   : > { %v1636_v20 = vpop.f32.mrf.mxu3  ;;  %v1541_v32 = vadd.f32 %v1540_v43, %v4425_v17  ;;  %v1963_v7 = vmax.f32 %v1588_v27, 0.0  ;;  %v3329_v27 = vld [vmem:[%s4774_s3 + $0x50] sm:$0xff] }
 0x1c4   : > { %v1637_v42 = vadd.f32 %v1636_v20, %v4431_v2 }
 0x1c6   : > { %v4564_v12 = vadd.f32 %v1685_v30, %v1637_v42 }
 0x1c8   : > { %v1589_v45 = vpop.f32.mrf.mxu2 }
 0x1c9   : > { %v1590_v53 = vadd.f32 %v1589_v45, %v1541_v32  ;;  %v3327_v45 = vld [vmem:[%s4774_s3 + $0x40] sm:$0xff] }
 0x1ca   : > { %v1699_v15 = vpop.f32.mrf.mxu1 }
 0x1cb   : > { %v1965_v8 = vmax.f32 %v1590_v53, 0.0  ;;  %v1700_v44 = vadd.f32 %v1699_v15, %v4436_v40  ;;  %v3332_v40 = vld [vmem:[%s4774_s3 + $0x68] sm:$0xff] }
 0x1cc   : > { %2166 = vmatpush.bf16.msra.mxu3 %v3332_v40 }
 0x1cd   : > { %3059 = vmatmul.msk.bf16.vlgmr.msra.gmra.mxu1 %vm1224_vm0, %v4819_v25  ;;  %2123 = vmatmul.bf16.vlgmr.msra.gmra.mxu2 %v4442_v4  ;;  %v4573_v17 = vpack.c.bf16 %v1965_v8, %v1963_v7 }
 0x1d0   : > { %v1748_v41 = vpop.f32.mrf.mxu2  ;;  %2167 = vmatpush.bf16.msra.mxu3 %v3331_v23 }
 0x1d1   : > { %v4575_v61 = vadd.f32 %v1748_v41, %v1700_v44 }
 0x1d2   : > { %v1701_v24 = vpop.f32.mrf.mxu1 }
 0x1d3   : > { %v4578_v29 = vadd.f32 %v1701_v24, %v4440_v59 }
 0x1d4   : > { %2168 = vmatpush.bf16.msra.mxu3 %v3330_v57 }
 0x1d8   : > { %v4580_v50 = vpop.f32.mrf.mxu2  ;;  %2169 = vmatpush.bf16.msra.mxu3 %v3329_v27 }
 0x1da   : > { %v1704_v63 = vpop.f32.mrf.mxu1 }
 0x1db   : > { %v1705_v16 = vadd.f32 %v1704_v63, %v4450_v6 }
 0x1dd   : > { %3060 = vmatmul.msk.bf16.gmra.mxu1 %vm1224_vm0, %v4114_v56  ;;  %2128 = vmatmul.bf16.gmra.mxu2 %v4458_v14 }
 0x1e0   : > { %v1753_v4 = vpop.f32.mrf.mxu2 }
 0x1e1   : > { %v4589_v35 = vadd.f32 %v1753_v4, %v1705_v16  ;;  %v3342_v4 = vld [vmem:[%s4776_s5 + $0x38] sm:$0xff] }
 0x1e2   : > { %v1706_v59 = vpop.f32.mrf.mxu1  ;;  %2305 = vmatpush.bf16.msra.mxu0 %v3342_v4 }
 0x1e3   : > { %v4592_v22 = vadd.f32 %v1706_v59, %v4454_v38 }
 0x1e8   : > { %v4594_v54 = vpop.f32.mrf.mxu2 }
 0x1ea   : > { %v1709_v6 = vpop.f32.mrf.mxu1 }
 0x1eb   : > { %v1710_v21 = vadd.f32 %v1709_v6, %v4464_v49 }
 0x1ed   : > { %3061 = vmatmul.msk.bf16.gmra.mxu1 %vm1224_vm0, %v4140_v51  ;;  %2133 = vmatmul.bf16.gmra.mxu2 %v4472_v18 }
 0x1f0   : > { %v1758_v56 = vpop.f32.mrf.mxu2 }
 0x1f1   : > { %v4603_v14 = vadd.f32 %v1758_v56, %v1710_v21 }
 0x1f2   : > { %v1711_v38 = vpop.f32.mrf.mxu1 }
 0x1f3   : > { %v4606_v46 = vadd.f32 %v1711_v38, %v4468_v36 }
 0x1f8   : > { %v4608_v34 = vpop.f32.mrf.mxu2 }
 0x1fa   : > { %v1714_v49 = vpop.f32.mrf.mxu1 }
 0x1fb   : > { %v1715_v26 = vadd.f32 %v1714_v49, %v4478_v3 }
 0x1fd   : > { %3062 = vmatmul.msk.bf16.gmra.mxu1 %vm1224_vm0, %v4167_v60  ;;  %2138 = vmatmul.bf16.gmra.mxu2 %v4489_v10  ;;  %v4633_v10 = vpop.f32.mrf.mxu3 }
 0x200   : > { %v1763_v51 = vpop.f32.mrf.mxu2 }
 0x201   : > { %v4617_v18 = vadd.f32 %v1763_v51, %v1715_v26 }
 0x202   : > { %v1716_v36 = vpop.f32.mrf.mxu1 }
 0x203   : > { %v4620_v58 = vadd.f32 %v1716_v36, %v4482_v19  ;;  %v3328_v19 = vld [vmem:[%s4774_s3 + $0x48] sm:$0xff]  ;;  %v3341_v36 = vld [vmem:[%s4776_s5 + $0x30] sm:$0xff] }
 0x204   : > { %2170 = vmatpush.bf16.msra.mxu3 %v3328_v19  ;;  %2306 = vmatpush.bf16.msra.mxu0 %v3341_v36 }
 0x205   : > { %v1797_v32 = vpop.f32.mrf.mxu3 }
 0x206   : > { %v1798_v63 = vadd.f32 %v1797_v32, %v4575_v61  ;;  %v1756_v61 = vadd.f32 %v4594_v54, %v4592_v22 }
 0x208   : > { %2171 = vmatpush.bf16.msra.mxu3 %v3327_v45  ;;  %v1765_v41 = vpop.f32.mrf.mxu2 }
 0x20a   : > { %v1719_v20 = vpop.f32.mrf.mxu1 }
 0x20b   : > { %v4626_v3 = vadd.f32 %v1719_v20, %v4498_v39  ;;  %v4820_v39 = vld [vmem:[#allocation15_spill] sm:$0xff] }
 0x20d   : > { %3063 = vmatmul.msk.bf16.gmra.mxu1 %vm1224_vm0, %v4192_v13  ;;  %2143 = vmatmul.bf16.gmra.mxu2 %v4516_v28  ;;  %v4644_v13 = vpop.f32.mrf.mxu0  ;;  %v1799_v37 = vpop.f32.mrf.mxu3 }
 0x212   : > { %v4631_v60 = vpop.f32.mrf.mxu1 }
 0x215   : > { %v1846_v30 = vpop.f32.mrf.mxu0  ;;  %v1802_v7 = vpop.f32.mrf.mxu3 }
 0x216   : > { %v1847_v59 = vadd.f32 %v1846_v30, %v1798_v63  ;;  %v1803_v26 = vadd.f32 %v1802_v7, %v4589_v35 }
 0x21a   : > { %v1724_v43 = vpop.f32.mrf.mxu1 }
 0x21b   : > { %v4639_v42 = vadd.f32 %v1724_v43, %v4525_v5 }
 0x21d   : > { %3064 = vmatmul.msk.bf16.gmra.mxu1 %vm1224_vm0, %v4820_v39  ;;  %2148 = vmatmul.bf16.gmra.mxu2 %v4540_v1  ;;  %v1848_v1 = vpop.f32.mrf.mxu0 }
 0x222   : > { %v4646_v28 = vpop.f32.mrf.mxu1 }
 0x225   : > { %v1851_v25 = vpop.f32.mrf.mxu0 }
 0x226   : > { %v1852_v27 = vadd.f32 %v1851_v25, %v1803_v26  ;;  %v3340_v25 = vld [vmem:[%s4776_s5 + $0x28] sm:$0xff] }
 0x227   : > { %2307 = vmatpush.bf16.msra.mxu0 %v3340_v25 }
 0x22a   : > { %v1729_v53 = vpop.f32.mrf.mxu1 }
 0x22b   : > { %v4652_v5 = vadd.f32 %v1729_v53, %v4546_v9  ;;  %v1804_v9 = vpop.f32.mrf.mxu3  ;;  %v1761_v53 = vadd.f32 %v4608_v34, %v4606_v46 }
 0x22c   : > { %v1805_v51 = vadd.f32 %v1804_v9, %v1756_v61 }
 0x22d   : > { %3065 = vmatmul.msk.bf16.gmra.mxu1 %vm1224_vm0, %v4362_v31  ;;  %2153 = vmatmul.bf16.gmra.mxu2 %v4558_v55  ;;  %v1853_v31 = vpop.f32.mrf.mxu0  ;;  %v1751_v55 = vadd.f32 %v4580_v50, %v4578_v29 }
 0x22e   : > { %v1854_v19 = vadd.f32 %v1853_v31, %v1805_v51 }
 0x232   : > { %v4657_v15 = vpop.f32.mrf.mxu1 }
 0x233   : > { %v1807_v16 = vpop.f32.mrf.mxu3 }
 0x234   : > { %v1808_v7 = vadd.f32 %v1807_v16, %v4603_v14  ;;  %v1766_v14 = vadd.f32 %v1765_v41, %v4620_v58 }
 0x23a   : > { %v1734_v8 = vpop.f32.mrf.mxu1 }
 0x23b   : > { %v4660_v44 = vadd.f32 %v1734_v8, %v4564_v12  ;;  %v1800_v12 = vadd.f32 %v1799_v37, %v1751_v55  ;;  %v1809_v56 = vpop.f32.mrf.mxu3  ;;  %v1768_v37 = vpop.f32.mrf.mxu2 }
 0x23c   : > { %v1810_v8 = vadd.f32 %v1809_v56, %v1761_v53  ;;  %v1769_v36 = vadd.f32 %v1768_v37, %v4626_v3  ;;  %v1629_v3 = vadd.f32 %v4535_v33, %v4431_v2 }
 0x23d   : > { %3066 = vmatmul.msk.bf16.gmra.mxu1 %vm1224_vm0, %v4411_v48  ;;  %2158 = vmatmul.bf16.gmra.mxu2 %v4573_v17  ;;  %v1856_v48 = vpop.f32.mrf.mxu0  ;;  %v1849_v17 = vadd.f32 %v1848_v1, %v1800_v12 }
 0x23e   : > { %v1857_v31 = vadd.f32 %v1856_v48, %v1808_v7  ;;  %v3339_v48 = vld [vmem:[%s4776_s5 + $0x20] sm:$0xff]  ;;  %v1678_v7 = vadd.f32 %v4530_v0, %v1629_v3 }
 0x23f   : > { %2308 = vmatpush.bf16.msra.mxu0 %v3339_v48 }
 0x242   : > { %v4665_v24 = vpop.f32.mrf.mxu1 }
 0x243   : > { %v1812_v20 = vpop.f32.mrf.mxu3  ;;  %v1770_v46 = vpop.f32.mrf.mxu2 }
 0x245   : > { %v1858_v50 = vpop.f32.mrf.mxu0 }
 0x246   : > { %v1859_v55 = vadd.f32 %v1858_v50, %v1810_v8 }
 0x24a   : > { %v1895_v40 = vpop.f32.mrf.mxu1 }
 0x24b   : > { %v1896_v23 = vadd.f32 %v1895_v40, %v1847_v59  ;;  %v1814_v35 = vpop.f32.mrf.mxu3 }
 0x24d   : > { %v1936_v38 = vmax.f32 %v1896_v23, 0.0  ;;  %v1861_v30 = vpop.f32.mrf.mxu0 }
 0x252   : > { %v1897_v6 = vpop.f32.mrf.mxu1 }
 0x253   : > { %v1898_v21 = vadd.f32 %v1897_v6, %v1849_v17  ;;  %v1817_v12 = vpop.f32.mrf.mxu3  ;;  %v1813_v6 = vadd.f32 %v1812_v20, %v4617_v18 }
 0x255   : > { %v1938_v57 = vmax.f32 %v1898_v21, 0.0  ;;  %v1863_v9 = vpop.f32.mrf.mxu0  ;;  %v1815_v21 = vadd.f32 %v1814_v35, %v1766_v14 }
 0x257   : > { %v1968_v29 = vpack.c.bf16 %v1938_v57, %v1936_v38  ;;  %v1773_v38 = vpop.f32.mrf.mxu2  ;;  %v1862_v57 = vadd.f32 %v1861_v30, %v1813_v6  ;;  %v1864_v61 = vadd.f32 %v1863_v9, %v1815_v21 }
 0x259   : > { %2172 = vmatmul.bf16.vlgmr.msra.gmra.mxu3 %v1968_v29  ;;  %v1624_v29 = vadd.f32 %v4508_v52, %v4431_v2  ;;  %v1818_v52 = vadd.f32 %v1817_v12, %v1769_v36 }
 0x25a   : > { %v1900_v49 = vpop.f32.mrf.mxu1 }
 0x25b   : > { %v1901_v43 = vadd.f32 %v1900_v49, %v1852_v27  ;;  %v1819_v56 = vpop.f32.mrf.mxu3  ;;  %v1673_v26 = vadd.f32 %v4503_v11, %v1624_v29 }
 0x25d   : > { %v1940_v45 = vmax.f32 %v1901_v43, 0.0  ;;  %v1866_v23 = vpop.f32.mrf.mxu0  ;;  %v1722_v27 = vadd.f32 %v4631_v60, %v1673_v26 }
 0x25e   : > { %v1867_v11 = vadd.f32 %v1866_v23, %v1818_v52 }
 0x25f   : > { %v1775_v43 = vpop.f32.mrf.mxu2 }
 0x262   : > { %v1902_v39 = vpop.f32.mrf.mxu1 }
 0x263   : > { %v1903_v32 = vadd.f32 %v1902_v39, %v1854_v19  ;;  %v1822_v20 = vpop.f32.mrf.mxu3  ;;  %v1771_v39 = vadd.f32 %v1770_v46, %v1722_v27 }
 0x265   : > { %v1942_v22 = vmax.f32 %v1903_v32, 0.0  ;;  %v1868_v49 = vpop.f32.mrf.mxu0 }
 0x267   : > { %v1970_v54 = vpack.c.bf16 %v1942_v22, %v1940_v45  ;;  %v1820_v45 = vadd.f32 %v1819_v56, %v1771_v39  ;;  %v3338_v22 = vld [vmem:[%s4776_s5 + $0x18] sm:$0xff]  ;;  %v1778_v35 = vpop.f32.mrf.mxu2 }
 0x268   : > { %2309 = vmatpush.bf16.msra.mxu0 %v3338_v22 }
 0x269   : > { %2177 = vmatmul.bf16.gmra.mxu3 %v1970_v54  ;;  %v1869_v54 = vadd.f32 %v1868_v49, %v1820_v45 }
 0x26a   : > { %v1905_v1 = vpop.f32.mrf.mxu1 }
 0x26b   : > { %v1906_v40 = vadd.f32 %v1905_v1, %v1857_v31  ;;  %v1824_v60 = vpop.f32.mrf.mxu3  ;;  %v1774_v31 = vadd.f32 %v1773_v38, %v4639_v42  ;;  %v1634_v42 = vadd.f32 %v4548_v62, %v4431_v2  ;;  %v3336_v62 = vld [vmem:[%s4776_s5 + $0x8] sm:$0xff] }
 0x26d   : > { %v1944_v34 = vmax.f32 %v1906_v40, 0.0  ;;  %v1871_v30 = vpop.f32.mrf.mxu0  ;;  %v1823_v33 = vadd.f32 %v1822_v20, %v1774_v31  ;;  %v1683_v6 = vadd.f32 %v4550_v47, %v1634_v42  ;;  %v3335_v47 = vld [vmem:[%s4776_s5] sm:$0xff] }
 0x26f   : > { %v1780_v46 = vpop.f32.mrf.mxu2  ;;  %v1872_v0 = vadd.f32 %v1871_v30, %v1823_v33  ;;  %v1732_v29 = vadd.f32 %v4657_v15, %v1683_v6 }
 0x272   : > { %v1907_v63 = vpop.f32.mrf.mxu1 }
 0x273   : > { %v1908_v4 = vadd.f32 %v1907_v63, %v1859_v55  ;;  %v1727_v55 = vadd.f32 %v4646_v28, %v1678_v7 }
 0x275   : > { %v1946_v59 = vmax.f32 %v1908_v4, 0.0  ;;  %v1873_v9 = vpop.f32.mrf.mxu0  ;;  %v1776_v63 = vadd.f32 %v1775_v43, %v1727_v55  ;;  %v1827_v4 = vpop.f32.mrf.mxu3 }
 0x277   : > { %v1972_v17 = vpack.c.bf16 %v1946_v59, %v1944_v34  ;;  %v1825_v34 = vadd.f32 %v1824_v60, %v1776_v63  ;;  %v3337_v59 = vld [vmem:[%s4776_s5 + $0x10] sm:$0xff]  ;;  %v1783_v38 = vpop.f32.mrf.mxu2 }
 0x278   : > { %2310 = vmatpush.bf16.msra.mxu0 %v3337_v59  ;;  %v1784_v30 = vadd.f32 %v1783_v38, %v4660_v44 }
 0x279   : > { %2182 = vmatmul.bf16.gmra.mxu3 %v1972_v17  ;;  %v1874_v23 = vadd.f32 %v1873_v9, %v1825_v34 }
 0x27a   : > { %v1910_v16 = vpop.f32.mrf.mxu1 }
 0x27b   : > { %v1911_v50 = vadd.f32 %v1910_v16, %v1862_v57  ;;  %v1779_v57 = vadd.f32 %v1778_v35, %v4652_v5 }
 0x27c   : > { %2311 = vmatpush.bf16.msra.mxu0 %v3336_v62 }
 0x27d   : > { %v1948_v18 = vmax.f32 %v1911_v50, 0.0  ;;  %v1876_v17 = vpop.f32.mrf.mxu0  ;;  %v1829_v21 = vpop.f32.mrf.mxu3  ;;  %v1781_v50 = vadd.f32 %v1780_v46, %v1732_v29 }
 0x27f   : > { %v1830_v26 = vadd.f32 %v1829_v21, %v1781_v50  ;;  %v1785_v15 = vpop.f32.mrf.mxu2 }
 0x280   : > { %2312 = vmatpush.bf16.msra.mxu0 %v3335_v47 }
 0x282   : > { %v1912_v58 = vpop.f32.mrf.mxu1 }
 0x283   : > { %v1913_v41 = vadd.f32 %v1912_v58, %v1864_v61 }
 0x285   : > { %v1950_v51 = vmax.f32 %v1913_v41, 0.0  ;;  %v1878_v49 = vpop.f32.mrf.mxu0  ;;  %v1828_v41 = vadd.f32 %v1827_v4, %v1779_v57  ;;  %v1832_v5 = vpop.f32.mrf.mxu3 }
 0x286   : > { %v1879_v36 = vadd.f32 %v1878_v49, %v1830_v26 }
 0x287   : > { %v1974_v19 = vpack.c.bf16 %v1950_v51, %v1948_v18  ;;  %v1877_v18 = vadd.f32 %v1876_v17, %v1828_v41  ;;  %v1639_v51 = vadd.f32 %v4633_v10, %v4431_v2  ;;  %v1833_v2 = vadd.f32 %v1832_v5, %v1784_v30 }
 0x289   : > { %2187 = vmatmul.bf16.gmra.mxu3 %v1974_v19  ;;  %v1688_v39 = vadd.f32 %v4644_v13, %v1639_v51 }
 0x28a   : > { %v1915_v32 = vpop.f32.mrf.mxu1 }
 0x28b   : > { %v1916_v53 = vadd.f32 %v1915_v32, %v1867_v11  ;;  %v1737_v45 = vadd.f32 %v4665_v24, %v1688_v39 }
 0x28d   : > { %v1952_v8 = vmax.f32 %v1916_v53, 0.0  ;;  %v1881_v43 = vpop.f32.mrf.mxu0  ;;  %v1786_v11 = vadd.f32 %v1785_v15, %v1737_v45  ;;  %v1834_v3 = vpop.f32.mrf.mxu3 }
 0x28e   : > { %v1882_v35 = vadd.f32 %v1881_v43, %v1833_v2 }
 0x28f   : > { %v1835_v10 = vadd.f32 %v1834_v3, %v1786_v11 }
 0x292   : > { %v1917_v37 = vpop.f32.mrf.mxu1 }
 0x293   : > { %v1918_v1 = vadd.f32 %v1917_v37, %v1869_v54  ;;  %v2124_v54 = vpop.f32.mrf.mxu2 }
 0x295   : > { %v1954_v25 = vmax.f32 %v1918_v1, 0.0  ;;  %v1883_v53 = vpop.f32.mrf.mxu0 }
 0x296   : > { %v1884_v37 = vadd.f32 %v1883_v53, %v1835_v10 }
 0x297   : > { %v1976_v40 = vpack.c.bf16 %v1954_v25, %v1952_v8 }
 0x299   : > { %2192 = vmatmul.bf16.gmra.mxu3 %v1976_v40  ;;  %v4725_v40 = vld [vmem:[%s4775_s4] ss:$0 sm:$0xff] }
 0x29a   : > { %v1920_v12 = vpop.f32.mrf.mxu1  ;;  %v2125_v63 = vadd.f32 %v4725_v40, %v2124_v54 }
 0x29b   : > { %v1921_v28 = vadd.f32 %v1920_v12, %v1872_v0  ;;  %v2126_v8 = vpop.f32.mrf.mxu2 }
 0x29c   : > { %v2127_v33 = vadd.f32 %v4725_v40, %v2126_v8 }
 0x29d   : > { %v1956_v56 = vmax.f32 %v1921_v28, 0.0 }
 0x2a2   : > { %v1922_v14 = vpop.f32.mrf.mxu1 }
 0x2a3   : > { %v1923_v16 = vadd.f32 %v1922_v14, %v1874_v23  ;;  %v2129_v24 = vpop.f32.mrf.mxu2 }
 0x2a4   : > { %v2130_v28 = vadd.f32 %v4725_v40, %v2129_v24 }
 0x2a5   : > { %v1958_v48 = vmax.f32 %v1923_v16, 0.0 }
 0x2a7   : > { %v1978_v61 = vpack.c.bf16 %v1958_v48, %v1956_v56 }
 0x2a9   : > { %2197 = vmatmul.bf16.gmra.mxu3 %v1978_v61 }
 0x2aa   : > { %v1925_v58 = vpop.f32.mrf.mxu1 }
 0x2ab   : > { %v1926_v27 = vadd.f32 %v1925_v58, %v1877_v18  ;;  %v2131_v31 = vpop.f32.mrf.mxu2 }
 0x2ac   : > { %v2132_v14 = vadd.f32 %v4725_v40, %v2131_v31 }
 0x2ad   : > { %v1960_v32 = vmax.f32 %v1926_v27, 0.0 }
 0x2b2   : > { %v1927_v20 = vpop.f32.mrf.mxu1 }
 0x2b3   : > { %v1928_v19 = vadd.f32 %v1927_v20, %v1879_v36  ;;  %v2134_v12 = vpop.f32.mrf.mxu2 }
 0x2b4   : > { %v2135_v50 = vadd.f32 %v4725_v40, %v2134_v12 }
 0x2b5   : > { %v1962_v52 = vmax.f32 %v1928_v19, 0.0 }
 0x2b7   : > { %v1980_v22 = vpack.c.bf16 %v1962_v52, %v1960_v32 }
 0x2b9   : > { %2202 = vmatmul.bf16.gmra.mxu3 %v1980_v22 }
 0x2ba   : > { %v1930_v60 = vpop.f32.mrf.mxu1 }
 0x2bb   : > { %v1931_v1 = vadd.f32 %v1930_v60, %v1882_v35  ;;  %v2136_v42 = vpop.f32.mrf.mxu2 }
 0x2bc   : > { %v2137_v62 = vadd.f32 %v4725_v40, %v2136_v42 }
 0x2bd   : > { %v1964_v25 = vmax.f32 %v1931_v1, 0.0 }
 0x2c2   : > { %v1932_v7 = vpop.f32.mrf.mxu1 }
 0x2c3   : > { %v1933_v13 = vadd.f32 %v1932_v7, %v1884_v37  ;;  %v2139_v56 = vpop.f32.mrf.mxu2 }
 0x2c4   : > { %v2140_v51 = vadd.f32 %v4725_v40, %v2139_v56 }
 0x2c5   : > { %v1966_v9 = vmax.f32 %v1933_v13, 0.0 }
 0x2c7   : > { %v1982_v44 = vpack.c.bf16 %v1966_v9, %v1964_v25 }
 0x2c9   : > { %2207 = vmatmul.bf16.gmra.mxu3 %v1982_v44 }
 0x2cb   : > { %v2141_v61 = vpop.f32.mrf.mxu2 }
 0x2cc   : > { %v2142_v36 = vadd.f32 %v4725_v40, %v2141_v61 }
 0x2d3   : > { %v2144_v5 = vpop.f32.mrf.mxu2 }
 0x2d4   : > { %v2145_v22 = vadd.f32 %v4725_v40, %v2144_v5 }
 0x2db   : > { %v2146_v20 = vpop.f32.mrf.mxu2 }
 0x2dc   : > { %v2173_v55 = vpop.f32.mrf.mxu3  ;;  %v2147_v11 = vadd.f32 %v4725_v40, %v2146_v20 }
 0x2dd   : > { %v2174_v4 = vadd.f32 %v2173_v55, %v2125_v63 }
 0x2df   : > { %v2213_v59 = vmax.f32 %v2174_v4, 0.0 }
 0x2e3   : > { %v2149_v45 = vpop.f32.mrf.mxu2 }
 0x2e4   : > { %v2175_v46 = vpop.f32.mrf.mxu3  ;;  %v2150_v1 = vadd.f32 %v4725_v40, %v2149_v45 }
 0x2e5   : > { %v2176_v34 = vadd.f32 %v2175_v46, %v2127_v33 }
 0x2e7   : > { %v2214_v0 = vmax.f32 %v2176_v34, 0.0 }
 0x2e9   : > { %v2229_v17 = vpack.c.bf16 %v2214_v0, %v2213_v59 }
 0x2eb   : > { %2313 = vmatmul.bf16.vlgmr.msra.gmra.mxu0 %v2229_v17  ;;  %v2151_v53 = vpop.f32.mrf.mxu2 }
 0x2ec   : > { %v2178_v23 = vpop.f32.mrf.mxu3  ;;  %v2152_v13 = vadd.f32 %v4725_v40, %v2151_v53 }
 0x2ed   : > { %v2179_v16 = vadd.f32 %v2178_v23, %v2130_v28 }
 0x2ef   : > { %v2215_v48 = vmax.f32 %v2179_v16, 0.0 }
 0x2f3   : > { %v2154_v7 = vpop.f32.mrf.mxu2 }
 0x2f4   : > { %v2180_v6 = vpop.f32.mrf.mxu3  ;;  %v2155_v12 = vadd.f32 %v4725_v40, %v2154_v7 }
 0x2f5   : > { %v2181_v21 = vadd.f32 %v2180_v6, %v2132_v14 }
 0x2f7   : > { %v2216_v38 = vmax.f32 %v2181_v21, 0.0 }
 0x2f9   : > { %v2230_v57 = vpack.c.bf16 %v2216_v38, %v2215_v48 }
 0x2fb   : > { %2318 = vmatmul.bf16.gmra.mxu0 %v2230_v57  ;;  %v2156_v55 = vpop.f32.mrf.mxu2 }
 0x2fc   : > { %v2183_v29 = vpop.f32.mrf.mxu3  ;;  %v2157_v33 = vadd.f32 %v4725_v40, %v2156_v55 }
 0x2fd   : > { %v2184_v49 = vadd.f32 %v2183_v29, %v2135_v50  ;;  %v3377_v29 = vld [vmem:[%s4777_s6] ss:$0 sm:$0xff] }
 0x2ff   : > { %v2217_v47 = vmax.f32 %v2184_v49, 0.0 }
 0x303   : > { %v2159_v59 = vpop.f32.mrf.mxu2 }
 0x304   : > { %v2185_v58 = vpop.f32.mrf.mxu3  ;;  %v2160_v14 = vadd.f32 %v4725_v40, %v2159_v59 }
 0x305   : > { %v2186_v41 = vadd.f32 %v2185_v58, %v2137_v62 }
 0x307   : > { %v2218_v26 = vmax.f32 %v2186_v41, 0.0 }
 0x309   : > { %v2231_v18 = vpack.c.bf16 %v2218_v26, %v2217_v47 }
 0x30b   : > { %2323 = vmatmul.bf16.gmra.mxu0 %v2231_v18  ;;  %v2161_v28 = vpop.f32.mrf.mxu2 }
 0x30c   : > { %v2188_v15 = vpop.f32.mrf.mxu3  ;;  %v2162_v16 = vadd.f32 %v4725_v40, %v2161_v28 }
 0x30d   : > { %v2189_v27 = vadd.f32 %v2188_v15, %v2140_v51 }
 0x30f   : > { %v2219_v39 = vmax.f32 %v2189_v27, 0.0 }
 0x314   : > { %v2190_v19 = vpop.f32.mrf.mxu3 }
 0x315   : > { %v2191_v43 = vadd.f32 %v2190_v19, %v2142_v36 }
 0x317   : > { %v2220_v32 = vmax.f32 %v2191_v43, 0.0 }
 0x319   : > { %v2232_v52 = vpack.c.bf16 %v2220_v32, %v2219_v39 }
 0x31b   : > { %2328 = vmatmul.bf16.gmra.mxu0 %v2232_v52 }
 0x31c   : > { %v2193_v30 = vpop.f32.mrf.mxu3 }
 0x31d   : > { %v2194_v3 = vadd.f32 %v2193_v30, %v2145_v22 }
 0x31f   : > { %v2221_v2 = vmax.f32 %v2194_v3, 0.0 }
 0x324   : > { %v2195_v54 = vpop.f32.mrf.mxu3 }
 0x325   : > { %v2196_v60 = vadd.f32 %v2195_v54, %v2147_v11 }
 0x327   : > { %v2222_v10 = vmax.f32 %v2196_v60, 0.0 }
 0x329   : > { %v2233_v35 = vpack.c.bf16 %v2222_v10, %v2221_v2 }
 0x32b   : > { %2333 = vmatmul.bf16.gmra.mxu0 %v2233_v35 }
 0x32c   : > { %v2198_v37 = vpop.f32.mrf.mxu3 }
 0x32d   : > { %v2199_v8 = vadd.f32 %v2198_v37, %v2150_v1 }
 0x32f   : > { %v2223_v44 = vmax.f32 %v2199_v8, 0.0 }
 0x334   : > { %v2200_v25 = vpop.f32.mrf.mxu3 }
 0x335   : > { %v2201_v9 = vadd.f32 %v2200_v25, %v2152_v13 }
 0x337   : > { %v2224_v24 = vmax.f32 %v2201_v9, 0.0 }
 0x339   : > { %v2234_v31 = vpack.c.bf16 %v2224_v24, %v2223_v44 }
 0x33b   : > { %2338 = vmatmul.bf16.gmra.mxu0 %v2234_v31 }
 0x33c   : > { %v2203_v63 = vpop.f32.mrf.mxu3 }
 0x33d   : > { %v2204_v4 = vadd.f32 %v2203_v63, %v2155_v12 }
 0x33f   : > { %v2225_v0 = vmax.f32 %v2204_v4, 0.0 }
 0x344   : > { %v2205_v46 = vpop.f32.mrf.mxu3 }
 0x345   : > { %v2206_v34 = vadd.f32 %v2205_v46, %v2157_v33 }
 0x347   : > { %v2226_v17 = vmax.f32 %v2206_v34, 0.0 }
 0x349   : > { %v2235_v42 = vpack.c.bf16 %v2226_v17, %v2225_v0 }
 0x34b   : > { %2343 = vmatmul.bf16.gmra.mxu0 %v2235_v42 }
 0x34c   : > { %v2208_v23 = vpop.f32.mrf.mxu3 }
 0x34d   : > { %v2209_v6 = vadd.f32 %v2208_v23, %v2160_v14 }
 0x34f   : > { %v2227_v48 = vmax.f32 %v2209_v6, 0.0 }
 0x354   : > { %v2210_v21 = vpop.f32.mrf.mxu3 }
 0x355   : > { %v2211_v56 = vadd.f32 %v2210_v21, %v2162_v16 }
 0x357   : > { %v2228_v38 = vmax.f32 %v2211_v56, 0.0 }
 0x359   : > { %v2236_v57 = vpack.c.bf16 %v2228_v38, %v2227_v48 }
 0x35b   : > { %2348 = vmatmul.bf16.gmra.mxu0 %v2236_v57 }
 0x368   : > { %v2314_v40 = vpop.f32.mrf.mxu0 }
 0x369   : > { %v2315_v61 = vadd.f32 %v3377_v29, %v2314_v40 }
 0x36b   : > { %2354 = vst [vmem:[%s4750_s11] sm:$0xff] %v2315_v61 }
 0x370   : > { %v2316_v50 = vpop.f32.mrf.mxu0 }
 0x371   : > { %v2317_v62 = vadd.f32 %v3377_v29, %v2316_v50 }
 0x373   : > { %2355 = vst [vmem:[%s4750_s11 + $0x8] sm:$0xff] %v2317_v62 }
 0x378   : > { %v2319_v49 = vpop.f32.mrf.mxu0 }
 0x379   : > { %v2320_v58 = vadd.f32 %v3377_v29, %v2319_v49 }
 0x37b   : > { %2356 = vst [vmem:[%s4750_s11 + $0x10] sm:$0xff] %v2320_v58 }
 0x380   : > { %v2321_v41 = vpop.f32.mrf.mxu0 }
 0x381   : > { %v2322_v47 = vadd.f32 %v3377_v29, %v2321_v41 }
 0x383   : > { %2357 = vst [vmem:[%s4750_s11 + $0x18] sm:$0xff] %v2322_v47 }
 0x388   : > { %v2324_v26 = vpop.f32.mrf.mxu0 }
 0x389   : > { %v2325_v18 = vadd.f32 %v3377_v29, %v2324_v26 }
 0x38b   : > { %2358 = vst [vmem:[%s4750_s11 + $0x20] sm:$0xff] %v2325_v18 }
 0x390   : > { %v2326_v5 = vpop.f32.mrf.mxu0 }
 0x391   : > { %v2327_v15 = vadd.f32 %v3377_v29, %v2326_v5 }
 0x393   : > { %2359 = vst [vmem:[%s4750_s11 + $0x28] sm:$0xff] %v2327_v15 }
 0x398   : > { %v2329_v51 = vpop.f32.mrf.mxu0 }
 0x399   : > { %v2330_v36 = vadd.f32 %v3377_v29, %v2329_v51 }
 0x39b   : > { %2360 = vst [vmem:[%s4750_s11 + $0x30] sm:$0xff] %v2330_v36 }
 0x3a0   : > { %v2331_v27 = vpop.f32.mrf.mxu0 }
 0x3a1   : > { %v2332_v20 = vadd.f32 %v3377_v29, %v2331_v27 }
 0x3a3   : > { %2361 = vst [vmem:[%s4750_s11 + $0x38] sm:$0xff] %v2332_v20 }
 0x3a8   : > { %v2334_v19 = vpop.f32.mrf.mxu0 }
 0x3a9   : > { %v2335_v43 = vadd.f32 %v3377_v29, %v2334_v19 }
 0x3ab   : > { %2362 = vst [vmem:[%s4750_s11 + $0x40] sm:$0xff] %v2335_v43 }
 0x3b0   : > { %v2336_v39 = vpop.f32.mrf.mxu0 }
 0x3b1   : > { %v2337_v32 = vadd.f32 %v3377_v29, %v2336_v39 }
 0x3b3   : > { %2363 = vst [vmem:[%s4750_s11 + $0x48] sm:$0xff] %v2337_v32 }
 0x3b8   : > { %v2339_v52 = vpop.f32.mrf.mxu0 }
 0x3b9   : > { %v2340_v30 = vadd.f32 %v3377_v29, %v2339_v52 }
 0x3bb   : > { %2364 = vst [vmem:[%s4750_s11 + $0x50] sm:$0xff] %v2340_v30 }
 0x3c0   : > { %v2341_v45 = vpop.f32.mrf.mxu0 }
 0x3c1   : > { %v2342_v22 = vadd.f32 %v3377_v29, %v2341_v45 }
 0x3c3   : > { %2365 = vst [vmem:[%s4750_s11 + $0x58] sm:$0xff] %v2342_v22 }
 0x3c8   : > { %v2344_v11 = vpop.f32.mrf.mxu0 }
 0x3c9   : > { %v2345_v3 = vadd.f32 %v3377_v29, %v2344_v11 }
 0x3cb   : > { %2366 = vst [vmem:[%s4750_s11 + $0x60] sm:$0xff] %v2345_v3 }
 0x3d0   : > { %v2346_v54 = vpop.f32.mrf.mxu0 }
 0x3d1   : > { %v2347_v60 = vadd.f32 %v3377_v29, %v2346_v54 }
 0x3d3   : > { %2367 = vst [vmem:[%s4750_s11 + $0x68] sm:$0xff] %v2347_v60 }
 0x3d8   : > { %v2349_v2 = vpop.f32.mrf.mxu0 }
 0x3d9   : > { %v2350_v10 = vadd.f32 %v3377_v29, %v2349_v2 }
 0x3db   : > { %2368 = vst [vmem:[%s4750_s11 + $0x70] sm:$0xff] %v2350_v10 }
 0x3e0   : > { %v2351_v53 = vpop.f32.mrf.mxu0 }
 0x3e1   : > { %v2352_v35 = vadd.f32 %v3377_v29, %v2351_v53 }
 0x3e3   : > { %2369 = vst [vmem:[%s4750_s11 + $0x78] sm:$0xff] %v2352_v35 }
 0x3e4 PF: > { %s17_s24 = sadd.s32 1, %s3384_s24  }
 0x3e5   : > { %p14_p4 = scmp.ge.s32.totalorder %s17_s24, 5  }
 0x3e7   :  { %16 = sbr.rel (!%p14_p4) target bundleno = 1 (0x1), region = 78 }

</bundles_post_ra>
